<compile_context>
chip_gen: v7x
topology: tpu7x:2x2x1
jax: 0.10.0
libtpu: 0.0.40
codegen_flags: <defaults>
</compile_context>

<pallas_src>
import jax
import jax.numpy as jnp
from jax.experimental import pallas as pl
from jax.experimental.pallas import tpu as pltpu


def afm_kernel(x_ref, lin_ref, aw_ref, ab_ref, pw_ref, fw_ref, bias_ref,
               out_ref, inner_ref):
    """Processes one batch tile.

    x_ref     : (F, tb, E) bf16   field embeddings for this batch tile
    lin_ref   : (1, 1, tb) f32    pre-summed FeaturesLinear term (lane-dense)
    aw_ref    : (E, A)     f32    attention Linear weight (input-major)
    ab_ref    : (1, A)     f32    attention Linear bias
    pw_ref    : (1, A)     f32    projection Linear weight (row vector)
    fw_ref    : (1, E)     f32    final fc Linear weight (row vector)
    bias_ref  : (3,) SMEM  f32    [proj_b, fc_b, linear_bias]
    out_ref   : (1, 1, tb) f32    prediction, batch on the lane axis
    inner_ref : (P_pad, tb, E) f32 VMEM scratch for pairwise interactions
    """
    F, tb, E = x_ref.shape
    p_pad = inner_ref.shape[0]
    A = aw_ref.shape[1]
    n_pairs = F * (F - 1) // 2

    proj_b = bias_ref[0]
    fc_b = bias_ref[1]
    lin_b = bias_ref[2]

    xe = x_ref[...].astype(jnp.float32)                         # (F, tb, E)

    # Pairwise interactions, grouped by the first field index: each group is
    # one outer-dim broadcast multiply and one full-tile store into scratch.
    off = 0
    for i in range(F - 1):
        n = F - 1 - i
        inner_ref[off:off + n, :, :] = xe[i:i + 1, :, :] * xe[i + 1:, :, :]
        off += n
    if off < p_pad:                                              # zero pad pairs
        inner_ref[off:, :, :] = jnp.zeros((p_pad - off, tb, E), jnp.float32)

    inner = inner_ref[...]                                       # (P_pad, tb, E)

    # Attention hidden layer; the reshapes are tile-aligned (tb % 8 == 0) and
    # therefore free.  One MXU matmul for the whole tile.
    h = jnp.dot(inner.reshape(p_pad * tb, E), aw_ref[...],
                preferred_element_type=jnp.float32) + ab_ref[...]
    h = jnp.maximum(h, 0.0).reshape(p_pad, tb, A)                # (P_pad, tb, A)

    # Attention scores (pairs on sublanes, batch on lanes): (P_pad, tb).
    scores = jnp.sum(h * pw_ref[...], axis=-1) + proj_b
    pair_id = jax.lax.broadcasted_iota(jnp.int32, (p_pad, tb), 0)
    scores = jnp.where(pair_id < n_pairs, scores, jnp.float32(-1e30))

    # Softmax over the (padded, masked) pair axis on a small dense slab.
    m = jnp.max(scores, axis=0, keepdims=True)                   # (1, tb)
    e = jnp.exp(scores - m)
    sm = e * pl.reciprocal(jnp.sum(e, axis=0, keepdims=True), approx=True)

    # Eval-mode identity dropouts let fc be folded inside the pair sum:
    #   fc(sum_p sm_p * inner_p) = sum_p sm_p * (inner_p . fc_w)
    c = jnp.sum(inner * fw_ref[...], axis=-1)                    # (P_pad, tb)
    cross = jnp.sum(sm * c, axis=0)                              # (tb,)

    out_ref[...] = cross.reshape(1, 1, tb) + lin_ref[...] + (fc_b + lin_b)


def afm_forward(x_idx, params, *, tile_b=None):
    """x_idx: (B, F) int32 raw per-field categorical indices."""
    B, F = x_idx.shape
    E = params["emb"].shape[1]
    A = params["attn_w"].shape[1]

    n_pairs = F * (F - 1) // 2
    p_pad = ((n_pairs + 7) // 8) * 8

    # ---- plain-JAX glue: offsets + embedding gather (field-major layout) ----
    idx = x_idx + params["offsets"][None, :]                       # (B, F)
    x_emb = jnp.take(params["emb"], idx.T, axis=0)                 # (F, B, E)
    lin_sum = jnp.sum(jnp.take(params["lin_w"][:, 0], idx, axis=0), axis=1)  # (B,)

    # Tile selection: multiple of 8 rows, >= 2 grid steps whenever B >= 2
    # (pipelining everywhere, both TensorCores on v7x), VMEM-safe default.
    if tile_b is None:
        tile_b = max(8, min(128, pl.cdiv(B, 2)))
    tile_b = ((tile_b + 7) // 8) * 8
    num_tiles = pl.cdiv(B, tile_b)
    B_pad = num_tiles * tile_b
    if B_pad != B:  # pad the last partial batch tile; sliced off after the call
        pad = B_pad - B
        x_emb = jnp.pad(x_emb, ((0, 0), (0, pad), (0, 0)))
        lin_sum = jnp.pad(lin_sum, ((0, pad),))

    x_bf = x_emb.astype(jnp.bfloat16)                  # halve the kernel HBM read
    lin_tiles = lin_sum.astype(jnp.float32).reshape(num_tiles, 1, tile_b)

    pw = params["proj_w"].reshape(1, A).astype(jnp.float32)   # (A,1) -> (1,A)
    fw = params["fc_w"].reshape(1, E).astype(jnp.float32)     # (E,1) -> (1,E)
    biases = jnp.stack(
        [params["proj_b"], params["fc_b"], params["lin_b"]]).astype(jnp.float32)

    out = pl.pallas_call(
        afm_kernel,
        out_shape=jax.ShapeDtypeStruct((num_tiles, 1, tile_b), jnp.float32),
        grid=(num_tiles,),
        in_specs=[
            pl.BlockSpec((F, tile_b, E), lambda i: (0, i, 0)),
            pl.BlockSpec((1, 1, tile_b), lambda i: (i, 0, 0)),
            # Weights use constant index_maps so they stay resident across steps.
            pl.BlockSpec((E, A), lambda i: (0, 0)),
            pl.BlockSpec((1, A), lambda i: (0, 0)),
            pl.BlockSpec((1, A), lambda i: (0, 0)),
            pl.BlockSpec((1, E), lambda i: (0, 0)),
            pl.BlockSpec(memory_space=pltpu.MemorySpace.SMEM),
        ],
        # Lane-dense output block: batch on the lane axis.
        out_specs=pl.BlockSpec((1, 1, tile_b), lambda i: (i, 0, 0)),
        scratch_shapes=[pltpu.VMEM((p_pad, tile_b, E), jnp.float32)],
        compiler_params=pltpu.CompilerParams(
            dimension_semantics=("parallel",),
            vmem_limit_bytes=32 * 1024 * 1024),
    )(x_bf, lin_tiles, params["attn_w"], params["attn_b"], pw, fw, biases)

    return out.reshape(B_pad, 1)[:B]


def afm_reference(x_idx, params):
    """Pure-JAX reference reproducing the PyTorch AFM forward (eval mode)."""
    F = x_idx.shape[1]
    idx = x_idx + params["offsets"][None, :]
    x_emb = jnp.take(params["emb"], idx, axis=0)
    w_lin = jnp.take(params["lin_w"][:, 0], idx, axis=0)
    row, col = jnp.triu_indices(F, k=1)
    pmat, qmat = x_emb[:, row, :], x_emb[:, col, :]
    inner = pmat * qmat                                              # (B, P, E)
    attn = jax.nn.relu(inner @ params["attn_w"] + params["attn_b"])  # (B, P, A)
    scores = attn @ params["proj_w"] + params["proj_b"]              # (B, P, 1)
    sm = jax.nn.softmax(scores, axis=1)
    attn_out = jnp.sum(sm * inner, axis=1)                           # (B, E)
    cross = attn_out @ params["fc_w"] + params["fc_b"]               # (B, 1)
    lin = jnp.sum(w_lin, axis=1, keepdims=True) + params["lin_b"]    # (B, 1)
    return lin + cross


if __name__ == "__main__":
    key = jax.random.PRNGKey(0)
    field_dims = (10, 20, 15, 12, 8, 25, 30, 18)   # 8 fields
    F = len(field_dims)
    E, A = 16, 32
    B = 16
    total = sum(field_dims)

    offs = [0]
    for d in field_dims[:-1]:
        offs.append(offs[-1] + d)

    ks = jax.random.split(key, 8)
    params = dict(
        offsets=jnp.array(offs, jnp.int32),
        emb=0.1 * jax.random.normal(ks[0], (total, E), jnp.float32),
        lin_w=0.1 * jax.random.normal(ks[1], (total, 1), jnp.float32),
        lin_b=jnp.zeros((), jnp.float32),
        attn_w=jax.random.normal(ks[2], (E, A), jnp.float32) / jnp.sqrt(E * 1.0),
        attn_b=0.01 * jax.random.normal(ks[3], (1, A), jnp.float32),
        proj_w=jax.random.normal(ks[4], (A, 1), jnp.float32) / jnp.sqrt(A * 1.0),
        proj_b=jnp.zeros((), jnp.float32),
        fc_w=jax.random.normal(ks[5], (E, 1), jnp.float32) / jnp.sqrt(E * 1.0),
        fc_b=jnp.zeros((), jnp.float32),
    )

    cols = []
    for f, d in enumerate(field_dims):
        cols.append(jax.random.randint(jax.random.fold_in(ks[6], f), (B,), 0, d))
    x = jnp.stack(cols, axis=1).astype(jnp.int32)   # (B, F) categorical indices

    out = jax.block_until_ready(afm_forward(x, params))
    ref = afm_reference(x, params)

    assert out.shape == (B, 1), out.shape
    if not jnp.allclose(out, ref, atol=1e-2, rtol=1e-2):
        raise AssertionError(f"mismatch: max abs err {jnp.max(jnp.abs(out - ref))}")
    print("KERNEL_OK")
</pallas_src>

<mosaic_0001>
module attributes {stable_mosaic.version = 11 : i64} {
  func.func @afm_kernel(%arg0: i32, %arg1: memref<8x8x16xbf16, #tpu.memory_space<vmem>>, %arg2: memref<1x1x8xf32, #tpu.memory_space<vmem>>, %arg3: memref<16x32xf32, #tpu.memory_space<vmem>>, %arg4: memref<1x32xf32, #tpu.memory_space<vmem>>, %arg5: memref<1x32xf32, #tpu.memory_space<vmem>>, %arg6: memref<1x16xf32, #tpu.memory_space<vmem>>, %arg7: memref<3xf32, #tpu.memory_space<smem>>, %arg8: memref<1x1x8xf32, #tpu.memory_space<vmem>>, %arg9: memref<32x8x16xf32, #tpu.memory_space<vmem>>) attributes {dimension_semantics = [#tpu.dimension_semantics<parallel>], iteration_bounds = array<i64: 2>, scalar_prefetch = 0 : i64, scratch_operands = 1 : i64, tpu.core_type = #tpu.core_type<tc>, window_params = [{transform_indices = @transform_0, window_bounds = array<i64: 8, 8, 16>}, {transform_indices = @transform_1, window_bounds = array<i64: 1, 1, 8>}, {pipeline_mode = #tpu.pipeline_mode<synchronous>, transform_indices = @transform_2, window_bounds = array<i64: 16, 32>}, {pipeline_mode = #tpu.pipeline_mode<synchronous>, transform_indices = @transform_3, window_bounds = array<i64: 1, 32>}, {pipeline_mode = #tpu.pipeline_mode<synchronous>, transform_indices = @transform_4, window_bounds = array<i64: 1, 32>}, {pipeline_mode = #tpu.pipeline_mode<synchronous>, transform_indices = @transform_5, window_bounds = array<i64: 1, 16>}, {transform_indices = @transform_6, window_bounds = array<i64: 3>}, {transform_indices = @transform_7, window_bounds = array<i64: 1, 1, 8>}]} {
    %c0 = arith.constant 0 : index
    %0 = memref.load %arg7[%c0] : memref<3xf32, #tpu.memory_space<smem>>
    %c1 = arith.constant 1 : index
    %1 = memref.load %arg7[%c1] : memref<3xf32, #tpu.memory_space<smem>>
    %c2 = arith.constant 2 : index
    %2 = memref.load %arg7[%c2] : memref<3xf32, #tpu.memory_space<smem>>
    %c0_0 = arith.constant 0 : index
    %c0_1 = arith.constant 0 : index
    %c0_2 = arith.constant 0 : index
    %3 = vector.load %arg1[%c0_0, %c0_1, %c0_2] : memref<8x8x16xbf16, #tpu.memory_space<vmem>>, vector<8x8x16xbf16>
    %4 = arith.extf %3 : vector<8x8x16xbf16> to vector<8x8x16xf32>
    %5 = vector.extract_strided_slice %4 {offsets = [0, 0, 0], sizes = [1, 8, 16], strides = [1, 1, 1]} : vector<8x8x16xf32> to vector<1x8x16xf32>
    %6 = vector.extract_strided_slice %4 {offsets = [1, 0, 0], sizes = [7, 8, 16], strides = [1, 1, 1]} : vector<8x8x16xf32> to vector<7x8x16xf32>
    %7 = vector.broadcast %5 : vector<1x8x16xf32> to vector<7x8x16xf32>
    %8 = arith.mulf %7, %6 : vector<7x8x16xf32>
    %c0_3 = arith.constant 0 : index
    %c0_4 = arith.constant 0 : index
    %c0_5 = arith.constant 0 : index
    %9 = vector.load %arg9[%c0_3, %c0_4, %c0_5] : memref<32x8x16xf32, #tpu.memory_space<vmem>>, vector<7x8x16xf32>
    tpu.vector_store %arg9[%c0_3, %c0_4, %c0_5], %8 {strides = array<i32>} : memref<32x8x16xf32, #tpu.memory_space<vmem>>, vector<7x8x16xf32>,
    %10 = vector.extract_strided_slice %4 {offsets = [1, 0, 0], sizes = [1, 8, 16], strides = [1, 1, 1]} : vector<8x8x16xf32> to vector<1x8x16xf32>
    %11 = vector.extract_strided_slice %4 {offsets = [2, 0, 0], sizes = [6, 8, 16], strides = [1, 1, 1]} : vector<8x8x16xf32> to vector<6x8x16xf32>
    %12 = vector.broadcast %10 : vector<1x8x16xf32> to vector<6x8x16xf32>
    %13 = arith.mulf %12, %11 : vector<6x8x16xf32>
    %c7 = arith.constant 7 : index
    %c0_6 = arith.constant 0 : index
    %c0_7 = arith.constant 0 : index
    %14 = vector.load %arg9[%c7, %c0_6, %c0_7] : memref<32x8x16xf32, #tpu.memory_space<vmem>>, vector<6x8x16xf32>
    tpu.vector_store %arg9[%c7, %c0_6, %c0_7], %13 {strides = array<i32>} : memref<32x8x16xf32, #tpu.memory_space<vmem>>, vector<6x8x16xf32>,
    %15 = vector.extract_strided_slice %4 {offsets = [2, 0, 0], sizes = [1, 8, 16], strides = [1, 1, 1]} : vector<8x8x16xf32> to vector<1x8x16xf32>
    %16 = vector.extract_strided_slice %4 {offsets = [3, 0, 0], sizes = [5, 8, 16], strides = [1, 1, 1]} : vector<8x8x16xf32> to vector<5x8x16xf32>
    %17 = vector.broadcast %15 : vector<1x8x16xf32> to vector<5x8x16xf32>
    %18 = arith.mulf %17, %16 : vector<5x8x16xf32>
    %c13 = arith.constant 13 : index
    %c0_8 = arith.constant 0 : index
    %c0_9 = arith.constant 0 : index
    %19 = vector.load %arg9[%c13, %c0_8, %c0_9] : memref<32x8x16xf32, #tpu.memory_space<vmem>>, vector<5x8x16xf32>
    tpu.vector_store %arg9[%c13, %c0_8, %c0_9], %18 {strides = array<i32>} : memref<32x8x16xf32, #tpu.memory_space<vmem>>, vector<5x8x16xf32>,
    %20 = vector.extract_strided_slice %4 {offsets = [3, 0, 0], sizes = [1, 8, 16], strides = [1, 1, 1]} : vector<8x8x16xf32> to vector<1x8x16xf32>
    %21 = vector.extract_strided_slice %4 {offsets = [4, 0, 0], sizes = [4, 8, 16], strides = [1, 1, 1]} : vector<8x8x16xf32> to vector<4x8x16xf32>
    %22 = vector.broadcast %20 : vector<1x8x16xf32> to vector<4x8x16xf32>
    %23 = arith.mulf %22, %21 : vector<4x8x16xf32>
    %c18 = arith.constant 18 : index
    %c0_10 = arith.constant 0 : index
    %c0_11 = arith.constant 0 : index
    %24 = vector.load %arg9[%c18, %c0_10, %c0_11] : memref<32x8x16xf32, #tpu.memory_space<vmem>>, vector<4x8x16xf32>
    tpu.vector_store %arg9[%c18, %c0_10, %c0_11], %23 {strides = array<i32>} : memref<32x8x16xf32, #tpu.memory_space<vmem>>, vector<4x8x16xf32>,
    %25 = vector.extract_strided_slice %4 {offsets = [4, 0, 0], sizes = [1, 8, 16], strides = [1, 1, 1]} : vector<8x8x16xf32> to vector<1x8x16xf32>
    %26 = vector.extract_strided_slice %4 {offsets = [5, 0, 0], sizes = [3, 8, 16], strides = [1, 1, 1]} : vector<8x8x16xf32> to vector<3x8x16xf32>
    %27 = vector.broadcast %25 : vector<1x8x16xf32> to vector<3x8x16xf32>
    %28 = arith.mulf %27, %26 : vector<3x8x16xf32>
    %c22 = arith.constant 22 : index
    %c0_12 = arith.constant 0 : index
    %c0_13 = arith.constant 0 : index
    %29 = vector.load %arg9[%c22, %c0_12, %c0_13] : memref<32x8x16xf32, #tpu.memory_space<vmem>>, vector<3x8x16xf32>
    tpu.vector_store %arg9[%c22, %c0_12, %c0_13], %28 {strides = array<i32>} : memref<32x8x16xf32, #tpu.memory_space<vmem>>, vector<3x8x16xf32>,
    %30 = vector.extract_strided_slice %4 {offsets = [5, 0, 0], sizes = [1, 8, 16], strides = [1, 1, 1]} : vector<8x8x16xf32> to vector<1x8x16xf32>
    %31 = vector.extract_strided_slice %4 {offsets = [6, 0, 0], sizes = [2, 8, 16], strides = [1, 1, 1]} : vector<8x8x16xf32> to vector<2x8x16xf32>
    %32 = vector.broadcast %30 : vector<1x8x16xf32> to vector<2x8x16xf32>
    %33 = arith.mulf %32, %31 : vector<2x8x16xf32>
    %c25 = arith.constant 25 : index
    %c0_14 = arith.constant 0 : index
    %c0_15 = arith.constant 0 : index
    %34 = vector.load %arg9[%c25, %c0_14, %c0_15] : memref<32x8x16xf32, #tpu.memory_space<vmem>>, vector<2x8x16xf32>
    tpu.vector_store %arg9[%c25, %c0_14, %c0_15], %33 {strides = array<i32>} : memref<32x8x16xf32, #tpu.memory_space<vmem>>, vector<2x8x16xf32>,
    %35 = vector.extract_strided_slice %4 {offsets = [6, 0, 0], sizes = [1, 8, 16], strides = [1, 1, 1]} : vector<8x8x16xf32> to vector<1x8x16xf32>
    %36 = vector.extract_strided_slice %4 {offsets = [7, 0, 0], sizes = [1, 8, 16], strides = [1, 1, 1]} : vector<8x8x16xf32> to vector<1x8x16xf32>
    %37 = arith.mulf %35, %36 : vector<1x8x16xf32>
    %c27 = arith.constant 27 : index
    %c0_16 = arith.constant 0 : index
    %c0_17 = arith.constant 0 : index
    %38 = vector.load %arg9[%c27, %c0_16, %c0_17] : memref<32x8x16xf32, #tpu.memory_space<vmem>>, vector<1x8x16xf32>
    tpu.vector_store %arg9[%c27, %c0_16, %c0_17], %37 {strides = array<i32>} : memref<32x8x16xf32, #tpu.memory_space<vmem>>, vector<1x8x16xf32>,
    %cst = arith.constant 0.000000e+00 : f32
    %39 = vector.broadcast %cst : f32 to vector<4x8x16xf32>
    %c28 = arith.constant 28 : index
    %c0_18 = arith.constant 0 : index
    %c0_19 = arith.constant 0 : index
    %40 = vector.load %arg9[%c28, %c0_18, %c0_19] : memref<32x8x16xf32, #tpu.memory_space<vmem>>, vector<4x8x16xf32>
    tpu.vector_store %arg9[%c28, %c0_18, %c0_19], %39 {strides = array<i32>} : memref<32x8x16xf32, #tpu.memory_space<vmem>>, vector<4x8x16xf32>,
    %c0_20 = arith.constant 0 : index
    %c0_21 = arith.constant 0 : index
    %c0_22 = arith.constant 0 : index
    %41 = vector.load %arg9[%c0_20, %c0_21, %c0_22] : memref<32x8x16xf32, #tpu.memory_space<vmem>>, vector<32x8x16xf32>
    %42 = vector.shape_cast %41 : vector<32x8x16xf32> to vector<256x16xf32>
    %c0_23 = arith.constant 0 : index
    %c0_24 = arith.constant 0 : index
    %43 = vector.load %arg3[%c0_23, %c0_24] : memref<16x32xf32, #tpu.memory_space<vmem>>, vector<16x32xf32>
    %cst_25 = arith.constant dense<0.000000e+00> : vector<256x32xf32>
    %44 = tpu.matmul %42, %43, %cst_25 {dimension_numbers = #tpu.dot_dimension_numbers<[1], [0], [0], [1], [0, 0, 1, 1], [], []>} : vector<256x16xf32>, vector<16x32xf32>, vector<256x32xf32> -> vector<256x32xf32>
    %c0_26 = arith.constant 0 : index
    %c0_27 = arith.constant 0 : index
    %45 = vector.load %arg4[%c0_26, %c0_27] : memref<1x32xf32, #tpu.memory_space<vmem>>, vector<1x32xf32>
    %46 = vector.broadcast %45 : vector<1x32xf32> to vector<256x32xf32>
    %47 = arith.addf %44, %46 : vector<256x32xf32>
    %cst_28 = arith.constant 0.000000e+00 : f32
    %48 = vector.broadcast %cst_28 : f32 to vector<256x32xf32>
    %49 = arith.maximumf %47, %48 : vector<256x32xf32>
    %50 = vector.shape_cast %49 : vector<256x32xf32> to vector<32x8x32xf32>
    %c0_29 = arith.constant 0 : index
    %c0_30 = arith.constant 0 : index
    %51 = vector.load %arg5[%c0_29, %c0_30] : memref<1x32xf32, #tpu.memory_space<vmem>>, vector<1x32xf32>
    %52 = vector.shape_cast %51 : vector<1x32xf32> to vector<1x1x32xf32>
    %53 = vector.broadcast %52 : vector<1x1x32xf32> to vector<32x8x32xf32>
    %54 = arith.mulf %50, %53 : vector<32x8x32xf32>
    %cst_31 = arith.constant dense<0.000000e+00> : vector<32x8xf32>
    %55 = vector.multi_reduction <add>, %54, %cst_31 [2] : vector<32x8x32xf32> to vector<32x8xf32>
    %56 = vector.broadcast %0 : f32 to vector<32x8xf32>
    %57 = arith.addf %55, %56 : vector<32x8xf32>
    %58 = tpu.iota {dimensions = array<i32: 0>} : vector<32x8xi32>
    %c28_i32 = arith.constant 28 : i32
    %59 = vector.broadcast %c28_i32 : i32 to vector<32x8xi32>
    %60 = arith.cmpi slt, %58, %59 : vector<32x8xi32>
    %cst_32 = arith.constant -1.000000e+30 : f32
    %61 = vector.broadcast %cst_32 : f32 to vector<32x8xf32>
    %62 = arith.select %60, %57, %61 : vector<32x8xi1>, vector<32x8xf32>
    %cst_33 = arith.constant dense<0xFF800000> : vector<8xf32>
    %63 = vector.multi_reduction <maximumf>, %62, %cst_33 [0] : vector<32x8xf32> to vector<8xf32>
    %64 = vector.shape_cast %63 : vector<8xf32> to vector<1x8xf32>
    %65 = vector.broadcast %64 : vector<1x8xf32> to vector<32x8xf32>
    %66 = arith.subf %62, %65 : vector<32x8xf32>
    %67 = math.exp %66 : vector<32x8xf32>
    %cst_34 = arith.constant dense<0.000000e+00> : vector<8xf32>
    %68 = vector.multi_reduction <add>, %67, %cst_34 [0] : vector<32x8xf32> to vector<8xf32>
    %69 = vector.shape_cast %68 : vector<8xf32> to vector<1x8xf32>
    %70 = tpu.reciprocal %69 {approx = true} : vector<1x8xf32> -> vector<1x8xf32>
    %71 = vector.broadcast %70 : vector<1x8xf32> to vector<32x8xf32>
    %72 = arith.mulf %67, %71 : vector<32x8xf32>
    %c0_35 = arith.constant 0 : index
    %c0_36 = arith.constant 0 : index
    %73 = vector.load %arg6[%c0_35, %c0_36] : memref<1x16xf32, #tpu.memory_space<vmem>>, vector<1x16xf32>
    %74 = vector.shape_cast %73 : vector<1x16xf32> to vector<1x1x16xf32>
    %75 = vector.broadcast %74 : vector<1x1x16xf32> to vector<32x8x16xf32>
    %76 = arith.mulf %41, %75 : vector<32x8x16xf32>
    %cst_37 = arith.constant dense<0.000000e+00> : vector<32x8xf32>
    %77 = vector.multi_reduction <add>, %76, %cst_37 [2] : vector<32x8x16xf32> to vector<32x8xf32>
    %78 = arith.mulf %72, %77 : vector<32x8xf32>
    %cst_38 = arith.constant dense<0.000000e+00> : vector<8xf32>
    %79 = vector.multi_reduction <add>, %78, %cst_38 [0] : vector<32x8xf32> to vector<8xf32>
    %80 = vector.shape_cast %79 : vector<8xf32> to vector<1x1x8xf32>
    %c0_39 = arith.constant 0 : index
    %c0_40 = arith.constant 0 : index
    %c0_41 = arith.constant 0 : index
    %81 = vector.load %arg2[%c0_39, %c0_40, %c0_41] : memref<1x1x8xf32, #tpu.memory_space<vmem>>, vector<1x1x8xf32>
    %82 = arith.addf %80, %81 : vector<1x1x8xf32>
    %83 = arith.addf %1, %2 : f32
    %84 = vector.broadcast %83 : f32 to vector<1x1x8xf32>
    %85 = arith.addf %82, %84 : vector<1x1x8xf32>
    %c0_42 = arith.constant 0 : index
    %c0_43 = arith.constant 0 : index
    %c0_44 = arith.constant 0 : index
    %86 = vector.load %arg8[%c0_42, %c0_43, %c0_44] : memref<1x1x8xf32, #tpu.memory_space<vmem>>, vector<1x1x8xf32>
    tpu.vector_store %arg8[%c0_42, %c0_43, %c0_44], %85 {strides = array<i32>} : memref<1x1x8xf32, #tpu.memory_space<vmem>>, vector<1x1x8xf32>,
    return
  }
  func.func @transform_0(%arg0: i32) -> (i32, i32, i32) {
    %c0_i32 = arith.constant 0 : i32
    %c0_i32_0 = arith.constant 0 : i32
    %c0_i32_1 = arith.constant 0 : i32
    return %c0_i32, %arg0, %c0_i32_0 : i32, i32, i32
  }
  func.func @transform_1(%arg0: i32) -> (i32, i32, i32) {
    %c0_i32 = arith.constant 0 : i32
    %c0_i32_0 = arith.constant 0 : i32
    %c0_i32_1 = arith.constant 0 : i32
    return %arg0, %c0_i32, %c0_i32_0 : i32, i32, i32
  }
  func.func @transform_2(%arg0: i32) -> (i32, i32) {
    %c0_i32 = arith.constant 0 : i32
    %c0_i32_0 = arith.constant 0 : i32
    %c0_i32_1 = arith.constant 0 : i32
    return %c0_i32, %c0_i32_0 : i32, i32
  }
  func.func @transform_3(%arg0: i32) -> (i32, i32) {
    %c0_i32 = arith.constant 0 : i32
    %c0_i32_0 = arith.constant 0 : i32
    %c0_i32_1 = arith.constant 0 : i32
    return %c0_i32, %c0_i32_0 : i32, i32
  }
  func.func @transform_4(%arg0: i32) -> (i32, i32) {
    %c0_i32 = arith.constant 0 : i32
    %c0_i32_0 = arith.constant 0 : i32
    %c0_i32_1 = arith.constant 0 : i32
    return %c0_i32, %c0_i32_0 : i32, i32
  }
  func.func @transform_5(%arg0: i32) -> (i32, i32) {
    %c0_i32 = arith.constant 0 : i32
    %c0_i32_0 = arith.constant 0 : i32
    %c0_i32_1 = arith.constant 0 : i32
    return %c0_i32, %c0_i32_0 : i32, i32
  }
  func.func @transform_6(%arg0: i32) -> i32 {
    %c0_i32 = arith.constant 0 : i32
    %c0_i32_0 = arith.constant 0 : i32
    return %c0_i32 : i32
  }
  func.func @transform_7(%arg0: i32) -> (i32, i32, i32) {
    %c0_i32 = arith.constant 0 : i32
    %c0_i32_0 = arith.constant 0 : i32
    %c0_i32_1 = arith.constant 0 : i32
    return %arg0, %c0_i32, %c0_i32_0 : i32, i32, i32
  }
}

</mosaic_0001>

<bundles_post_ra>
// kernel: tpu_custom_call.1
= control target key start
LH: loop header
LB: loop body
LE: loop exit
PB: predicated region body
PF: predicated region fallthrough
CT: control target
= control target key end

     0   :  { %12 = vsyncpa [#allocation4], 0  ;;  %s3063_s0 = inlined_call_operand.hbm [shape: bf16[8,16,16], index: 0, kind: input, shape index: {}]   ;;  %s3064_s1 = inlined_call_operand.vmem [shape: f32[2,1,8], index: 1, kind: input, shape index: {}]   ;;  %s3065_s2 = inlined_call_operand.hbm [shape: f32[16,32], index: 2, kind: input, shape index: {}]   ;;  %s3066_s3 = inlined_call_operand.vmem [shape: f32[1,32], index: 3, kind: input, shape index: {}]   ;;  %s3067_s4 = inlined_call_operand.vmem [shape: f32[1,32], index: 4, kind: input, shape index: {}]   ;;  %s3068_s5 = inlined_call_operand.vmem [shape: f32[1,16], index: 5, kind: input, shape index: {}]   ;;  %s3069_s6 = inlined_call_operand.vmem [shape: f32[3], index: 6, kind: input, shape index: {}]   ;;  %s3070_s7 = inlined_call_operand.hbm [shape: f32[2,1,8], index: 7, kind: output, shape index: {}]  }
   0x1   :  { %14 = vsyncpa [#allocation4 + $0x1], 0 }
   0x2   :  { %15 = vsyncpa [#allocation8], 0 }
   0x3   :  { %16 = vsyncpa [#allocation6], 0 }
   0x4   :  { %17 = vsyncpa [#allocation5], 0 }
   0x5   :  { %19 = vsyncpa [#allocation5 + $0x1], 0  ;;  %s2149_s24 = smov 0   ;;  %s2151_s25 = smov 0  }
   0x6   :  { %s2153_s26 = smov 0   ;;  %s2155_s27 = smov 0  }
   0x7 LB: > { %s2170_s28 = sadd.s32 4294967295, %s2098_s27   ;;  %s1707_s29 = sadd.s32 4294967294, %s2098_s27   ;;  %s2098_s27 = sphi %s2155_s27, %s3112_s27   ;;  %s2094_s26 = sphi %s2153_s26, %s3111_s26   ;;  %s2090_s25 = sphi %s2151_s25, %s3110_s25   ;;  %s2086_s24 = sphi %s2149_s24, %s3109_s24  }
   0x8   : > { %s2174_s30 = sadd.s32 1, %s2098_s27   ;;  %s32_s8 = sadd.s32 1, %s2094_s26 }
   0x9   : > { %s29_s9 = ssub.s32 %s2098_s27, %s2174_s30  ;;  %p39_p0 = scmp.ne.s32.totalorder %s2094_s26, %s2090_s25 }
   0xa   : > { %p30_p1 = scmp.eq.s32.totalorder %s29_s9, 0  ;;  %p40_p2 = scmp.eq.s32.totalorder %s2098_s27, 0 }
   0xb   : > { %p45_p3 = scmp.ne.s32.totalorder %s2090_s25, %s2086_s24  ;;  %p3071_p4 = scmp.eq.s32.totalorder %s2170_s28, 0 }
   0xc   : > { %s2186_s10 = scalar_select %p30_p1, %s2094_s26, %s32_s8  }
   0xd   : > { %p2188_p5 = por %p40_p2, %p39_p0  ;;  %p2194_p6 = por %p3071_p4, %p45_p3 }
   0xe   : > { %3080 = sst [smem:[#allocation15_spill]] %s2186_s10  ;;  %p200_p7 = scmp.eq.s32.totalorder %s2170_s28, 1 }
   0xf   : > { %s3081_s11 = scalar_select %p2188_p5, 1, 0 }
  0x10   : > { %s3082_s12 = scalar_select %p2194_p6, 1, 0 }
  0x11   : > { %p206_p8 = scmp.eq.s32.totalorder %s1707_s29, 1  ;;  %p1708_p9 = scmp.ge.s32.totalorder %s2098_s27, 1 }
  0x12   : > { %p213_p10 = scmp.lt.s32.totalorder %s2098_s27, 3  ;;  %p2201_p11 = por %p200_p7, %p39_p0 }
  0x13   : > { %p2205_p12 = por %p206_p8, %p45_p3  ;;  %s2100_s16 = smov [#allocation7]  }
  0x14   : > { %s3083_s13 = scalar_select %p2201_p11, 1, 0 }
  0x15   : > { %s3084_s14 = scalar_select %p2205_p12, 1, 0 }
  0x16   : > { %p2209_p13 = pnand %p1708_p9, %p213_p10  ;;  %s225_s17 = sshll.u32 %s2100_s16, 4  ;;  %s226_s17 = int_to_ptr.vmem [resolvable:$true] %s225_s17 }
  0x17   : > { %s248_s21 = sshll.u32 %s3069_s6, 4  ;;  %s1951_s29 = scalar_lea.hbm %s3065_s2, 256  ;;  %s2226_s21 = int_to_ptr.vmem [resolvable:$true] %s248_s21 }
  0x18   : > { %s3085_s15 = scalar_select %p2209_p13, 1, 0 }
  0x19   : > { %p1881_p1 = pneg %p2209_p13  ;;  %p1952_p7 = scmp.ne.s32.totalorder %s3065_s2, %s1951_s29 }
  0x1b   : > { %p2217_p2 = pnand %p1881_p1, %p3071_p4  ;;  %p1958_p1 = scmp.lt.u32.totalorder %s1951_s29, %s3065_s2 }
  0x1d   : > { %p1953_p8 = pneg %p2217_p2 }
  0x1f   : > { %p1954_p9 = pnand %p1953_p8, %p1952_p7 }
  0x21   : > { %p1955_p10 = pneg %p1954_p9 }
  0x23   : > { %p1960_p0 = pnand %p1958_p1, %p1955_p10 }
  0x25   : > { %1963 = shalt.err (!%p1960_p0)
}
  0x26   : > { %s1964_s19 = scalar_lea.vmem %s226_s17, 256  ;;  %p1972_p11 = scmp.lt.s32.totalorder %s226_s17, %s226_s17 }
  0x27   : > { %p1965_p4 = scmp.ne.s32.totalorder %s226_s17, %s1964_s19  ;;  %p1973_p6 = scmp.lt.s32.totalorder %s1964_s19, %s1964_s19 }
  0x29   : > { %p1967_p3 = pnand %p1965_p4, %p1953_p8  ;;  %p1974_p13 = por %p1973_p6, %p1972_p11 }
  0x2b   : > { %p1968_p12 = pneg %p1967_p3 }
  0x2d   : > { %p1975_p5 = pnand %p1974_p13, %p1968_p12 }
  0x2f   : > { %1978 = shalt.err (!%p1975_p5)
}
  0x30   : > { %s3075_s20 = smov 128   ;;  %s2102_s10 = smov 8  }
  0x31   : > { %1884 = dma.hbm_to_vmem [thread:$0]  (!%p2217_p2), %s3065_s2, 256, %s226_s17, [#allocation8], %s3075_s20, %s3075_s20, %s2102_s10  }
  0x32   : > { %p3087_p4 = scmp.ne.s32.totalorder %s3081_s11, 0  ;;  %p3088_p6 = scmp.lt.s32.totalorder %s2098_s27, 2 }
  0x33   : > { %s1979_s8 = scalar_lea.vmem %s2226_s21, 16  ;;  %p1987_p0 = scmp.lt.s32.totalorder %s2226_s21, %s2226_s21 }
  0x34   : > { %p2256_p11 = pnand %p3088_p6, %p3087_p4  ;;  %p1980_p5 = scmp.ne.s32.totalorder %s2226_s21, %s1979_s8 }
  0x35   : > { %p1988_p3 = scmp.lt.s32.totalorder %s1979_s8, %s1979_s8 }
  0x36   : > { %p1982_p12 = pnand %p1980_p5, %p1953_p8 }
  0x37   : > { %p1989_p7 = por %p1988_p3, %p1987_p0 }
  0x38   : > { %p1983_p13 = pneg %p1982_p12 }
  0x3a   : > { %p1990_p9 = pnand %p1989_p7, %p1983_p13 }
  0x3c   : > { %1993 = shalt.err (!%p1990_p9)
}
  0x3d   : > { %s2103_s9 = smov [#allocation9]   ;;  %s259_s11 = sand.u32 1, %s2094_s26  }
  0x3e   : > { %1887 = dma.vmem_to_smem (!%p2217_p2), %s2226_s21, 16, %s2103_s9, [#allocation6]  }
  0x3f   : > { %s1712_s17 = sshll.u32 %s259_s11, 5  ;;  %s1713_s16 = sshll.u32 %s2098_s27, 6 }
  0x40   : > { %s2275_s22 = scalar_lea.hbm %s3063_s0, %s1713_s16  ;;  %s263_s23 = scalar_lea.vmem [#allocation3], %s1712_s17 }
  0x41   : > { %s269_s18 = sshll.u32 %s263_s23, 4  ;;  %s2279_s8 = scalar_lea.sflag [#allocation4], %s259_s11  ;;  %s2277_s18 = int_to_ptr.vmem [resolvable:$true] %s269_s18 }
  0x42   : > { %s1994_s20 = scalar_lea.hbm %s2275_s22, 512  ;;  %p1996_p8 = pneg %p2256_p11 }
  0x43   : > { %p1995_p2 = scmp.ne.s32.totalorder %s2275_s22, %s1994_s20  ;;  %s1999_s16 = scalar_lea.hbm %s3063_s0, 1024 }
  0x44   : > { %p2000_p4 = scmp.lt.u32.totalorder %s2275_s22, %s3063_s0  ;;  %p2001_p6 = scmp.lt.u32.totalorder %s1999_s16, %s1994_s20 }
  0x45   : > { %p1997_p10 = pnand %p1996_p8, %p1995_p2  ;;  %p2003_p12 = scmp.lt.u32.totalorder %s1994_s20, %s2275_s22 }
  0x46   : > { %p2002_p5 = por %p2001_p6, %p2000_p4 }
  0x47   : > { %p1998_p1 = pneg %p1997_p10 }
  0x48   : > { %p2004_p13 = por %p2003_p12, %p2002_p5 }
  0x4a   : > { %p2005_p0 = pnand %p2004_p13, %p1998_p1 }
  0x4c   : > { %2008 = shalt.err (!%p2005_p0)
}
  0x4d   : > { %s2009_s11 = scalar_lea.vmem %s2277_s18, 512  ;;  %s2104_s17 = smov [#allocation3]  }
  0x4e   : > { %p2010_p3 = scmp.ne.s32.totalorder %s2277_s18, %s2009_s11  ;;  %s2014_s23 = sshll.u32 %s2104_s17, 4  ;;  %s2015_s23 = int_to_ptr.vmem [resolvable:$false] %s2014_s23 }
  0x4f   : > { %s2016_s21 = scalar_lea.vmem %s2015_s23, 1024  ;;  %p2017_p2 = scmp.lt.s32.totalorder %s2277_s18, %s2015_s23 }
  0x50   : > { %p2012_p7 = pnand %p2010_p3, %p1996_p8  ;;  %p2018_p10 = scmp.lt.s32.totalorder %s2016_s21, %s2009_s11 }
  0x52   : > { %p2013_p9 = pneg %p2012_p7  ;;  %p2019_p4 = por %p2018_p10, %p2017_p2 }
  0x54   : > { %p2020_p6 = pnand %p2019_p4, %p2013_p9 }
  0x56   : > { %2023 = shalt.err (!%p2020_p6)
}
  0x57   : > { %s2105_s20 = smov 64   ;;  %s2106_s9 = smov 4  }
  0x58   : > { %s3090_s16 = smov 128   ;;  %p3091_p8 = scmp.ne.s32.totalorder %s3085_s15, 0 }
  0x59   : > { %1891 = dma.hbm_to_vmem [thread:$0]  (!%p2256_p11), %s2275_s22, 512, %s2277_s18, %s2279_s8, %s3090_s16, %s2105_s20, %s2106_s9  }
  0x5a   : > { %287 = sbr.rel (%p3091_p8) target bundleno = 668 (0x29c), region = 48 }
  0x61   : > { %s2311_s19 = sand.u32 1, %s2090_s25   ;;  %p3092_p1 = scmp.ne.s32.totalorder %s3082_s12, 0 }
  0x62   : > { %s1715_s10 = sshll.u32 %s2311_s19, 5  ;;  %s290_s11 = scalar_lea.sflag [#allocation4], %s2311_s19 }
  0x63   : > { %s293_s17 = scalar_lea.vmem [#allocation3], %s1715_s10 }
  0x64   : > { %2069 = dma.done.wait (%p3092_p1), %s290_s11, 512  }
  0x65   : > { %2071 = vsyncadd (%p3092_p1), %s290_s11, 4294966784  ;;  %p3093_p5 = scmp.eq.s32.totalorder %s2170_s28, 0 }
  0x67   : > { %2073 = dma.done.wait (%p3093_p5), [#allocation8], 256   ;;  %p3094_p11 = pmov %p3093_p5 }
  0x68   : > { %p3095_p12 = pmov %p3093_p5 }
  0x69   : > { %2075 = vsyncadd (%p3094_p11), [#allocation8], 4294967040 }
  0x6a   : > { %2077 = dma.done.wait (%p3095_p12), [#allocation6], 16   ;;  %p3096_p13 = pmov %p3093_p5 }
  0x6c   : > { %2079 = vsyncadd (%p3096_p13), [#allocation6], 4294967280 }
  0x6d   : > { %306 = sfence }
  0x6e   : > { %v457_v0 = vld [vmem:[#allocation7] sm:$0xff]  ;;  %v458_v1 = vld [vmem:[#allocation7 + $0x8] sm:$0xff]  ;;  %vm364_vm0 = vcmask 130048   ;;  %v1776_v7 = vld [vmem:[%s293_s17 + $0x18] sm:$0xff]   ;;  %v2107_v8 = vmov 0.0   ;;  %vm858_vm1 = vcmask 261120  }
  0x6f   : > { %v1759_v2 = vld [vmem:[%s293_s17] sm:$0xff]   ;;  %v1863_v3 = vpack.c.bf16 %v458_v1, %v457_v0  ;;  %v1774_v6 = vld [vmem:[%s293_s17 + $0x8] sm:$0xff]   ;;  %421 = vst.msk [vmem:[#allocation2 + $0xe0] sm:$0xff] %vm364_vm0, %v2107_v8  ;;  %422 = vst.msk [vmem:[#allocation2 + $0xe8] sm:$0xff] %vm364_vm0, %v2107_v8  ;;  %v1772_v11 = vunpack.c.l.bf16 %v1776_v7  ;;  %v1773_v12 = vunpack.c.h.bf16 %v1776_v7  ;;  %s338_s23 = sld [smem:[#allocation9]]  ;;  %vm1159_vm2 = vcmask 1041409  }
  0x70   : > { %v1760_v4 = vunpack.c.l.bf16 %v1759_v2  ;;  %v2327_v5 = vunpack.c.h.bf16 %v1759_v2  ;;  %423 = vst.msk [vmem:[#allocation2 + $0xf0] sm:$0xff] %vm364_vm0, %v2107_v8  ;;  %424 = vst.msk [vmem:[#allocation2 + $0xf8] sm:$0xff] %vm364_vm0, %v2107_v8  ;;  %v1764_v9 = vunpack.c.l.bf16 %v1774_v6  ;;  %v1765_v10 = vunpack.c.h.bf16 %v1774_v6  ;;  %v1775_v13 = vld [vmem:[%s293_s17 + $0x10] sm:$0xff]   ;;  %p335_p0 = scmp.lt.s32.totalorder %s2170_s28, 1  ;;  %s1718_s21 = sld [smem:[#allocation9 + $0x1]] }
  0x71   : > { %1864 = vmatprep.subr.bf16.mxu0 %v1863_v3  ;;  %1867 = vmatprep.subr.bf16.mxu1 %v1863_v3  ;;  %v1768_v15 = vunpack.c.l.bf16 %v1775_v13  ;;  %v1769_v16 = vunpack.c.h.bf16 %v1775_v13  ;;  %v417_v37 = vmul.f32 %v1773_v12, %v1772_v11  ;;  %vm1161_vm3 = vcmask 1042434   ;;  %s1719_s20 = sld [smem:[#allocation9 + $0x2]]  ;;  %s1755_s12 = sshll.u32 %s2170_s28, 4 }
  0x72   : > { %v357_v14 = vmul.f32 %v2327_v5, %v1760_v4  ;;  %1866 = vmatpush3.bf16.msra.mxu0 %v1863_v3  ;;  %1868 = vmatpush3.bf16.msra.mxu1 %v1863_v3  ;;  %v388_v17 = vmul.f32 %v1772_v11, %v1764_v9  ;;  %v358_v18 = vmul.f32 %v1764_v9, %v1760_v4  ;;  %vm1163_vm4 = vcmask 1043459   ;;  %s336_s9 = scalar_select %p335_p0, %s2170_s28, 1 }
  0x73   : > { %v389_v19 = vmul.f32 %v1773_v12, %v1764_v9  ;;  %v396_v20 = vmul.f32 %v1768_v15, %v1765_v10  ;;  %v397_v21 = vmul.f32 %v1769_v16, %v1765_v10  ;;  %v398_v22 = vmul.f32 %v1772_v11, %v1765_v10  ;;  %419 = vst.msk [vmem:[#allocation2 + $0xd8] sm:$0xff] %vm364_vm0, %v417_v37  ;;  %s334_s15 = scalar_lea.vmem [#allocation10], %s2311_s19  ;;  %s3019_s8 = scalar_lea.hbm %s3070_s7, %s1755_s12 }
  0x74   : > { %365 = vst.msk [vmem:[#allocation2] sm:$0xff] %vm364_vm0, %v357_v14  ;;  %v399_v23 = vmul.f32 %v1773_v12, %v1765_v10  ;;  %394 = vst.msk [vmem:[#allocation2 + $0x80] sm:$0xff] %vm364_vm0, %v388_v17  ;;  %v359_v24 = vmul.f32 %v1765_v10, %v1760_v4  ;;  %v360_v25 = vmul.f32 %v1768_v15, %v1760_v4  ;;  %vm1165_vm5 = vcmask 1044484   ;;  %s337_s11 = scalar_lea.vmem %s3064_s1, %s336_s9  ;;  %s1610_s29 = sshll.u32 %s334_s15, 4  ;;  %s3021_s29 = int_to_ptr.vmem [resolvable:$true] %s1610_s29 }
  0x75   : > { %366 = vst.msk [vmem:[#allocation2 + $0x8] sm:$0xff] %vm364_vm0, %v358_v18  ;;  %395 = vst.msk [vmem:[#allocation2 + $0x88] sm:$0xff] %vm364_vm0, %v389_v19  ;;  %v405_v26 = vmul.f32 %v1769_v16, %v1768_v15  ;;  %v406_v27 = vmul.f32 %v1772_v11, %v1768_v15  ;;  %v361_v28 = vmul.f32 %v1769_v16, %v1760_v4  ;;  %vm1167_vm6 = vcmask 1045509   ;;  %p3105_p7 = scmp.ne.s32.totalorder %s3083_s13, 0  ;;  %s2108_s28 = smov [#allocation10]  }
  0x76   : > { %401 = vst.msk [vmem:[#allocation2 + $0x90] sm:$0xff] %vm364_vm0, %v396_v20  ;;  %402 = vst.msk [vmem:[#allocation2 + $0x98] sm:$0xff] %vm364_vm0, %v397_v21  ;;  %v362_v29 = vmul.f32 %v1772_v11, %v1760_v4  ;;  %v407_v30 = vmul.f32 %v1773_v12, %v1768_v15  ;;  %v412_v31 = vmul.f32 %v1772_v11, %v1769_v16  ;;  %v2474_v7 = vld [vmem:[#allocation2 + $0xe8] sm:$0xff]  ;;  %v2507_v20 = vld [vmem:[%s3067_s4] ss:$0 sm:$0xff]  ;;  %vm1169_vm7 = vcmask 1046534  }
  0x77   : > { %403 = vst.msk [vmem:[#allocation2 + $0xa0] sm:$0xff] %vm364_vm0, %v398_v22  ;;  %404 = vst.msk [vmem:[#allocation2 + $0xa8] sm:$0xff] %vm364_vm0, %v399_v23  ;;  %v363_v32 = vmul.f32 %v1773_v12, %v1760_v4  ;;  %v372_v33 = vmul.f32 %v1764_v9, %v2327_v5  ;;  %v373_v34 = vmul.f32 %v1765_v10, %v2327_v5  ;;  %vm1171_vm8 = vcmask 1047559   ;;  %s1592_s17 = sadd.f32 %s1719_s20, %s1718_s21  ;;  %s2024_s21 = scalar_lea.vmem %s3021_s29, 16 }
  0x78   : > { %367 = vst.msk [vmem:[#allocation2 + $0x10] sm:$0xff] %vm364_vm0, %v359_v24  ;;  %368 = vst.msk [vmem:[#allocation2 + $0x18] sm:$0xff] %vm364_vm0, %v360_v25  ;;  %v374_v35 = vmul.f32 %v1768_v15, %v2327_v5  ;;  %v413_v36 = vmul.f32 %v1773_v12, %v1769_v16  ;;  %v375_v38 = vmul.f32 %v1769_v16, %v2327_v5  ;;  %vm1202_vm10 = vcmask 64512   ;;  %p2025_p3 = scmp.ne.s32.totalorder %s3021_s29, %s2024_s21  ;;  %s2028_s20 = sshll.u32 %s2108_s28, 4  ;;  %s2029_s20 = int_to_ptr.vmem [resolvable:$false] %s2028_s20 }
  0x79   : > { %409 = vst.msk [vmem:[#allocation2 + $0xb0] sm:$0xff] %vm364_vm0, %v405_v26  ;;  %410 = vst.msk [vmem:[#allocation2 + $0xb8] sm:$0xff] %vm364_vm0, %v406_v27  ;;  %v376_v39 = vmul.f32 %v1772_v11, %v2327_v5  ;;  %v377_v40 = vmul.f32 %v1773_v12, %v2327_v5  ;;  %v385_v41 = vmul.f32 %v1765_v10, %v1764_v9  ;;  %v2462_v5 = vld [vmem:[#allocation2 + $0xe0] sm:$0xff]  ;;  %v2490_v11 = vld [vmem:[#allocation2 + $0xf8] sm:$0xff]  ;;  %vm1595_vm11 = vcmask 57344   ;;  %s2030_s9 = scalar_lea.vmem %s2029_s20, 32  ;;  %p2031_p10 = scmp.lt.s32.totalorder %s3021_s29, %s2029_s20 }
  0x7a   : > { %369 = vst.msk [vmem:[#allocation2 + $0x20] sm:$0xff] %vm364_vm0, %v361_v28  ;;  %370 = vst.msk [vmem:[#allocation2 + $0x28] sm:$0xff] %vm364_vm0, %v362_v29  ;;  %v386_v42 = vmul.f32 %v1768_v15, %v1764_v9  ;;  %v387_v43 = vmul.f32 %v1769_v16, %v1764_v9  ;;  %v2458_v3 = vld [vmem:[#allocation2 + $0xd8] sm:$0xff]  ;;  %v2478_v9 = vld [vmem:[#allocation2 + $0xf0] sm:$0xff]  ;;  %p2026_p9 = pnand %p2025_p3, %p3105_p7  ;;  %p2032_p4 = scmp.lt.s32.totalorder %s2030_s9, %s2024_s21 }
  0x7b   : > { %411 = vst.msk [vmem:[#allocation2 + $0xc0] sm:$0xff] %vm364_vm0, %v407_v30  ;;  %415 = vst.msk [vmem:[#allocation2 + $0xc8] sm:$0xff] %vm364_vm0, %v412_v31  ;;  %v2364_v44 = vld [vmem:[#allocation2] sm:$0xff] }
  0x7c   : > { %371 = vst.msk [vmem:[#allocation2 + $0x30] sm:$0xff] %vm364_vm0, %v363_v32  ;;  %379 = vst.msk [vmem:[#allocation2 + $0x38] sm:$0xff] %vm364_vm0, %v372_v33  ;;  %1815 = vmatprep.mubr.msk.f32.mxu0 %vm364_vm0, %v2364_v44  ;;  %v2372_v45 = vld [vmem:[#allocation2 + $0x80] sm:$0xff]  ;;  %v2374_v46 = vld [vmem:[#allocation2 + $0x8] sm:$0xff]  ;;  %p2027_p2 = pneg %p2026_p9  ;;  %p2033_p6 = por %p2032_p4, %p2031_p10 }
  0x7d   : > { %380 = vst.msk [vmem:[#allocation2 + $0x40] sm:$0xff] %vm364_vm0, %v373_v34  ;;  %381 = vst.msk [vmem:[#allocation2 + $0x48] sm:$0xff] %vm364_vm0, %v374_v35  ;;  %v2376_v47 = vld [vmem:[#allocation2 + $0x88] sm:$0xff]  ;;  %1839 = vmatprep.mubr.msk.f32.mxu1 %vm364_vm0, %v2372_v45  ;;  %1816 = vmatmul.mubr.msk.f32.vlgmr.msra.gmra.mrb[0].mxu0 %vm364_vm0, %v2374_v46  ;;  %v2382_v48 = vld [vmem:[#allocation2 + $0x90] sm:$0xff] }
  0x7e   : > { %416 = vst.msk [vmem:[#allocation2 + $0xd0] sm:$0xff] %vm364_vm0, %v413_v36  ;;  %382 = vst.msk [vmem:[#allocation2 + $0x50] sm:$0xff] %vm364_vm0, %v375_v38  ;;  %1840 = vmatmul.mubr.msk.f32.vlgmr.msra.gmra.mrb[0].mxu1 %vm364_vm0, %v2376_v47  ;;  %v2392_v51 = vld [vmem:[#allocation2 + $0x98] sm:$0xff]  ;;  %v2398_v53 = vld [vmem:[#allocation2 + $0xa0] sm:$0xff]  ;;  %p2034_p8 = pnand %p2033_p6, %p2027_p2 }
  0x7f   : > { %383 = vst.msk [vmem:[#allocation2 + $0x58] sm:$0xff] %vm364_vm0, %v376_v39  ;;  %384 = vst.msk [vmem:[#allocation2 + $0x60] sm:$0xff] %vm364_vm0, %v377_v40  ;;  %v2386_v49 = vld [vmem:[#allocation2 + $0x10] sm:$0xff]  ;;  %v2388_v50 = vld [vmem:[#allocation2 + $0x18] sm:$0xff]  ;;  %1842 = vmatprep.mubr.msk.f32.mxu1 %vm364_vm0, %v2382_v48 }
  0x80   : > { %391 = vst.msk [vmem:[#allocation2 + $0x68] sm:$0xff] %vm364_vm0, %v385_v41  ;;  %392 = vst.msk [vmem:[#allocation2 + $0x70] sm:$0xff] %vm364_vm0, %v386_v42  ;;  %1818 = vmatprep.mubr.msk.f32.mxu0 %vm364_vm0, %v2386_v49  ;;  %v2410_v55 = vld [vmem:[#allocation2 + $0xa8] sm:$0xff]  ;;  %v2414_v57 = vld [vmem:[#allocation2 + $0xb0] sm:$0xff] }
  0x81   : > { %393 = vst.msk [vmem:[#allocation2 + $0x78] sm:$0xff] %vm364_vm0, %v387_v43  ;;  %v2396_v52 = vld [vmem:[#allocation2 + $0x20] sm:$0xff]  ;;  %1819 = vmatmul.mubr.msk.f32.gmra.mrb[2].mxu0 %vm364_vm0, %v2388_v50  ;;  %v2406_v54 = vld [vmem:[#allocation2 + $0x28] sm:$0xff]  ;;  %3097 = vst [vmem:[#allocation16_spill] sm:$0xff] %v2410_v55 }
  0x82   : > { %1843 = vmatmul.mubr.msk.f32.gmra.mrb[2].mxu1 %vm364_vm0, %v2392_v51  ;;  %1821 = vmatprep.mubr.msk.f32.mxu0 %vm364_vm0, %v2396_v52  ;;  %3098 = vst [vmem:[#allocation17_spill] sm:$0xff] %v2414_v57  ;;  %v2426_v59 = vld [vmem:[#allocation2 + $0xb8] sm:$0xff]  ;;  %v2430_v61 = vld [vmem:[#allocation2 + $0xc0] sm:$0xff]  ;;  %v2442_v63 = vld [vmem:[#allocation2 + $0xc8] sm:$0xff] }
  0x83   : > { %1845 = vmatprep.mubr.msk.f32.mxu1 %vm364_vm0, %v2398_v53  ;;  %v2412_v56 = vld [vmem:[#allocation2 + $0x30] sm:$0xff]  ;;  %v2422_v58 = vld [vmem:[#allocation2 + $0x38] sm:$0xff]  ;;  %3099 = vst [vmem:[#allocation18_spill] sm:$0xff] %v2426_v59  ;;  %3100 = vst [vmem:[#allocation19_spill] sm:$0xff] %v2478_v9 }
  0x84   : > { %v2428_v60 = vld [vmem:[#allocation2 + $0x40] sm:$0xff]  ;;  %v2438_v62 = vld [vmem:[#allocation2 + $0x48] sm:$0xff] }
  0x85   : > { %1822 = vmatmul.mubr.msk.f32.gmra.mrb[4].mxu0 %vm364_vm0, %v2406_v54  ;;  %v2444_v0 = vld [vmem:[#allocation2 + $0x50] sm:$0xff]  ;;  %v2499_v12 = vld [vmem:[%s3066_s3] ss:$0 sm:$0xff] }
  0x86   : > { %1846 = vmatmul.mubr.msk.f32.gmra.mrb[4].mxu1 %vm364_vm0, %v2410_v55  ;;  %1824 = vmatprep.mubr.msk.f32.mxu0 %vm364_vm0, %v2412_v56  ;;  %v2446_v1 = vld [vmem:[#allocation2 + $0xd0] sm:$0xff]  ;;  %v2454_v2 = vld [vmem:[#allocation2 + $0x58] sm:$0xff]  ;;  %v2460_v4 = vld [vmem:[#allocation2 + $0x60] sm:$0xff] }
  0x87   : > { %1848 = vmatprep.mubr.msk.f32.mxu1 %vm364_vm0, %v2414_v57  ;;  %v2470_v6 = vld [vmem:[#allocation2 + $0x68] sm:$0xff]  ;;  %v2476_v8 = vld [vmem:[#allocation2 + $0x70] sm:$0xff] }
  0x88   : > { %v2486_v10 = vld [vmem:[#allocation2 + $0x78] sm:$0xff] }
  0x89   : > { %1825 = vmatmul.mubr.msk.f32.gmra.mrb[6].mxu0 %vm364_vm0, %v2422_v58 }
  0x8a   : > { %1849 = vmatmul.mubr.msk.f32.gmra.mrb[6].mxu1 %vm364_vm0, %v2426_v59  ;;  %1827 = vmatprep.mubr.msk.f32.mxu0 %vm364_vm0, %v2428_v60 }
  0x8b   : > { %1851 = vmatprep.mubr.msk.f32.mxu1 %vm364_vm0, %v2430_v61 }
  0x8d   : > { %1828 = vmatmul.mubr.msk.f32.gmra.mrb[8].mxu0 %vm364_vm0, %v2438_v62 }
  0x8e   : > { %1852 = vmatmul.mubr.msk.f32.gmra.mrb[8].mxu1 %vm364_vm0, %v2442_v63  ;;  %1830 = vmatprep.mubr.msk.f32.mxu0 %vm364_vm0, %v2444_v0 }
  0x8f   : > { %1854 = vmatprep.mubr.msk.f32.mxu1 %vm364_vm0, %v2446_v1 }
  0x91   : > { %1831 = vmatmul.mubr.msk.f32.gmra.mrb[10].mxu0 %vm364_vm0, %v2454_v2 }
  0x92   : > { %1855 = vmatmul.mubr.msk.f32.gmra.mrb[10].mxu1 %vm364_vm0, %v2458_v3  ;;  %1833 = vmatprep.mubr.msk.f32.mxu0 %vm364_vm0, %v2460_v4 }
  0x93   : > { %1857 = vmatprep.mubr.msk.f32.mxu1 %vm364_vm0, %v2462_v5 }
  0x95   : > { %1834 = vmatmul.mubr.msk.f32.gmra.mrb[12].mxu0 %vm364_vm0, %v2470_v6 }
  0x96   : > { %1858 = vmatmul.mubr.msk.f32.gmra.mrb[12].mxu1 %vm364_vm0, %v2474_v7  ;;  %1836 = vmatprep.mubr.msk.f32.mxu0 %vm364_vm0, %v2476_v8 }
  0x97   : > { %1860 = vmatprep.mubr.msk.f32.mxu1 %vm364_vm0, %v2478_v9 }
  0x99   : > { %1837 = vmatmul.mubr.msk.f32.gmra.mrb[14].mxu0 %vm364_vm0, %v2486_v10 }
  0x9a   : > { %1861 = vmatmul.mubr.msk.f32.gmra.mrb[14].mxu1 %vm364_vm0, %v2490_v11 }
 0x150   : > { %v1817_v13 = vpop.f32.mrb[0].mxu0 }
 0x151   : > { %v634_v14 = vadd.f32 %v1817_v13, %v2499_v12  ;;  %v1841_v15 = vpop.f32.mrb[0].mxu1  ;;  %v628_v16 = vpop.f32.mrb[1].mxu0 }
 0x152   : > { %v714_v17 = vadd.f32 %v1841_v15, %v2499_v12  ;;  %v708_v18 = vpop.f32.mrb[1].mxu1  ;;  %v629_v19 = vadd.f32 %v2499_v12, %v628_v16 }
 0x153   : > { %v788_v21 = vmax.f32 %v634_v14, 0.0  ;;  %v709_v22 = vadd.f32 %v2499_v12, %v708_v18 }
 0x154   : > { %v804_v23 = vmax.f32 %v714_v17, 0.0  ;;  %v1820_v24 = vpop.f32.mrb[2].mxu0  ;;  %v787_v27 = vmax.f32 %v629_v19, 0.0 }
 0x155   : > { %v803_v25 = vmax.f32 %v709_v22, 0.0  ;;  %v1844_v26 = vpop.f32.mrb[2].mxu1  ;;  %v827_v28 = vmul.f32 %v2507_v20, %v788_v21  ;;  %v644_v29 = vadd.f32 %v1820_v24, %v2499_v12  ;;  %v638_v30 = vpop.f32.mrb[3].mxu0 }
 0x156   : > { %v718_v31 = vpop.f32.mrb[3].mxu1  ;;  %v843_v34 = vmul.f32 %v2507_v20, %v804_v23  ;;  %v826_v40 = vmul.f32 %v2507_v20, %v787_v27  ;;  %v724_v42 = vadd.f32 %v1844_v26, %v2499_v12  ;;  %v639_v21 = vadd.f32 %v2499_v12, %v638_v30 }
 0x157   : > { %v862_v32 = vsel %vm858_vm1, %v827_v28, 0.0  ;;  %v842_v33 = vmul.f32 %v2507_v20, %v803_v25  ;;  %v790_v38 = vmax.f32 %v644_v29, 0.0  ;;  %v719_v29 = vadd.f32 %v2499_v12, %v718_v31 }
 0x158   : > { %863 = vadd.xlane.f32.xlu1 %v862_v32  ;;  %v1823_v35 = vpop.f32.mrb[4].mxu0  ;;  %v910_v43 = vsel %vm858_vm1, %v843_v34, 0.0  ;;  %v859_v15 = vsel %vm858_vm1, %v826_v40, 0.0  ;;  %v806_v19 = vmax.f32 %v724_v42, 0.0  ;;  %v789_v32 = vmax.f32 %v639_v21, 0.0 }
 0x159   : > { %v1847_v36 = vpop.f32.mrb[4].mxu1  ;;  %v907_v37 = vsel %vm858_vm1, %v842_v33, 0.0  ;;  %v648_v39 = vpop.f32.mrb[5].mxu0  ;;  %v829_v17 = vmul.f32 %v2507_v20, %v790_v38  ;;  %v654_v31 = vadd.f32 %v1823_v35, %v2499_v12 }
 0x15a   : > { %v2517_v41 = vpop.f32.mrb[5].mxu1  ;;  %908 = vadd.xlane.f32.xlu0 %v907_v37  ;;  %v845_v34 = vmul.f32 %v2507_v20, %v806_v19  ;;  %v649_v9 = vadd.f32 %v2499_v12, %v648_v39 }
 0x15b   : > { %v868_v24 = vsel %vm858_vm1, %v829_v17, 0.0 }
 0x15c   : > { %911 = vadd.xlane.f32.xlu1 %v910_v43  ;;  %v2521_v13 = vpop.f32.mrb[6].mxu0  ;;  %v916_v21 = vsel %vm858_vm1, %v845_v34, 0.0  ;;  %v791_v55 = vmax.f32 %v649_v9, 0.0 }
 0x15d   : > { %v2523_v14 = vpop.f32.mrb[6].mxu1  ;;  %v2526_v16 = vpop.f32.mrb[7].mxu0 }
 0x15e   : > { %v2529_v18 = vpop.f32.mrb[7].mxu1 }
 0x160   : > { %860 = vadd.xlane.f32.xlu1 %v859_v15  ;;  %v2532_v22 = vpop.f32.mrb[8].mxu0 }
 0x161   : > { %v1853_v23 = vpop.f32.mrb[8].mxu1  ;;  %v668_v25 = vpop.f32.mrb[9].mxu0 }
 0x162   : > { %v754_v26 = vadd.f32 %v1853_v23, %v2499_v12  ;;  %v748_v27 = vpop.f32.mrb[9].mxu1  ;;  %v669_v28 = vadd.f32 %v2499_v12, %v668_v25  ;;  %v805_v25 = vmax.f32 %v719_v29, 0.0 }
 0x163   : > { %v749_v33 = vadd.f32 %v2499_v12, %v748_v27  ;;  %v828_v27 = vmul.f32 %v2507_v20, %v789_v32  ;;  %v792_v32 = vmax.f32 %v654_v31, 0.0 }
 0x164   : > { %v812_v30 = vmax.f32 %v754_v26, 0.0  ;;  %869 = vadd.xlane.f32.xlu1 %v868_v24  ;;  %v1832_v37 = vpop.f32.mrb[10].mxu0  ;;  %v795_v43 = vmax.f32 %v669_v28, 0.0  ;;  %v734_v28 = vadd.f32 %v1847_v36, %v2499_v12 }
 0x165   : > { %v811_v38 = vmax.f32 %v749_v33, 0.0  ;;  %v1856_v40 = vpop.f32.mrb[10].mxu1  ;;  %v678_v42 = vpop.f32.mrb[11].mxu0  ;;  %v684_v29 = vadd.f32 %v1832_v37, %v2499_v12 }
 0x166   : > { %v851_v15 = vmul.f32 %v2507_v20, %v812_v30  ;;  %v764_v17 = vadd.f32 %v1856_v40, %v2499_v12  ;;  %v758_v23 = vpop.f32.mrb[11].mxu1  ;;  %v834_v35 = vmul.f32 %v2507_v20, %v795_v43 }
 0x167   : > { %v850_v24 = vmul.f32 %v2507_v20, %v811_v38  ;;  %v798_v59 = vmax.f32 %v684_v29, 0.0  ;;  %v729_v29 = vadd.f32 %v2499_v12, %v2517_v41 }
 0x168   : > { %v934_v19 = vsel %vm858_vm1, %v851_v15, 0.0  ;;  %917 = vadd.xlane.f32.xlu1 %v916_v21  ;;  %v1835_v26 = vpop.f32.mrb[12].mxu0  ;;  %v814_v40 = vmax.f32 %v764_v17, 0.0  ;;  %v865_v15 = vsel %vm858_vm1, %v828_v27, 0.0  ;;  %v844_v21 = vmul.f32 %v2507_v20, %v805_v25 }
 0x169   : > { %935 = vadd.xlane.f32.xlu0 %v934_v19  ;;  %v1859_v33 = vpop.f32.mrb[12].mxu1  ;;  %v2548_v30 = vpop.f32.mrb[13].mxu0  ;;  %v931_v38 = vsel %vm858_vm1, %v850_v24, 0.0  ;;  %v808_v19 = vmax.f32 %v734_v28, 0.0  ;;  %v883_v31 = vsel %vm858_vm1, %v834_v35, 0.0  ;;  %v831_v28 = vmul.f32 %v2507_v20, %v792_v32 }
 0x16a   : > { %v2552_v34 = vpop.f32.mrb[13].mxu1  ;;  %v853_v27 = vmul.f32 %v2507_v20, %v814_v40  ;;  %v913_v24 = vsel %vm858_vm1, %v844_v21, 0.0  ;;  %v837_v21 = vmul.f32 %v2507_v20, %v798_v59 }
 0x16c   : > { %866 = vadd.xlane.f32.xlu1 %v865_v15  ;;  %v1838_v36 = vpop.f32.mrb[14].mxu0 }
 0x16d   : > { %932 = vadd.xlane.f32.xlu0 %v931_v38  ;;  %v2558_v17 = vpop.f32.mrb[14].mxu1  ;;  %v704_v37 = vadd.f32 %v1838_v36, %v2499_v12  ;;  %v698_v43 = vpop.f32.mrb[15].mxu0  ;;  %v759_v38 = vadd.f32 %v2499_v12, %v758_v23  ;;  %v847_v23 = vmul.f32 %v2507_v20, %v808_v19  ;;  %v774_v19 = vadd.f32 %v1859_v33, %v2499_v12 }
 0x16e   : > { %v778_v57 = vpop.f32.mrb[15].mxu1  ;;  %v699_v25 = vadd.f32 %v2499_v12, %v698_v43  ;;  %v940_v43 = vsel %vm858_vm1, %v853_v27, 0.0  ;;  %v892_v27 = vsel %vm858_vm1, %v837_v21, 0.0 }
 0x16f   : > { %v779_v39 = vadd.f32 %v2499_v12, %v778_v57  ;;  %v802_v15 = vmax.f32 %v704_v37, 0.0  ;;  %v874_v57 = vsel %vm858_vm1, %v831_v28, 0.0  ;;  %v813_v41 = vmax.f32 %v759_v38, 0.0 }
 0x170   : > { %914 = vadd.xlane.f32.xlu1 %v913_v24  ;;  %v801_v36 = vmax.f32 %v699_v25, 0.0  ;;  %v807_v24 = vmax.f32 %v729_v29, 0.0  ;;  %v659_v28 = vadd.f32 %v2499_v12, %v2526_v16 }
 0x171   : > { %884 = vadd.xlane.f32.xlu0 %v883_v31  ;;  %v817_v35 = vmax.f32 %v779_v39, 0.0  ;;  %v841_v40 = vmul.f32 %v2507_v20, %v802_v15  ;;  %v679_v31 = vadd.f32 %v2499_v12, %v678_v42  ;;  %v922_v39 = vsel %vm858_vm1, %v847_v23, 0.0 }
 0x172   : > { %v840_v32 = vmul.f32 %v2507_v20, %v801_v36  ;;  %v830_v42 = vmul.f32 %v2507_v20, %v791_v55  ;;  %v852_v38 = vmul.f32 %v2507_v20, %v813_v41  ;;  %v816_v36 = vmax.f32 %v774_v19, 0.0 }
 0x173   : > { %v856_v37 = vmul.f32 %v2507_v20, %v817_v35  ;;  %v2578_v25 = vsel %vm858_vm1, %v841_v40, 0.0  ;;  %v797_v15 = vmax.f32 %v679_v31, 0.0  ;;  %v694_v35 = vadd.f32 %v1835_v26, %v2499_v12 }
 0x174   : > { %875 = vadd.xlane.f32.xlu1 %v874_v57  ;;  %v2582_v9 = vsel %vm858_vm1, %v840_v32, 0.0  ;;  %v739_v40 = vadd.f32 %v2499_v12, %v2529_v18  ;;  %v793_v33 = vmax.f32 %v659_v28, 0.0  ;;  %v871_v29 = vsel %vm858_vm1, %v830_v42, 0.0 }
 0x175   : > { %941 = vadd.xlane.f32.xlu0 %v940_v43  ;;  %v2585_v59 = vsel %vm858_vm1, %v856_v37, 0.0  ;;  %v846_v16 = vmul.f32 %v2507_v20, %v807_v24  ;;  %v937_v43 = vsel %vm858_vm1, %v852_v38, 0.0  ;;  %v836_v55 = vmul.f32 %v2507_v20, %v797_v15 }
 0x176   : > { %v800_v21 = vmax.f32 %v694_v35, 0.0  ;;  %v855_v32 = vmul.f32 %v2507_v20, %v816_v36  ;;  %v809_v57 = vmax.f32 %v739_v40, 0.0  ;;  %v674_v26 = vadd.f32 %v2532_v22, %v2499_v12 }
 0x177   : > { %v919_v18 = vsel %vm858_vm1, %v846_v16, 0.0  ;;  %v832_v23 = vmul.f32 %v2507_v20, %v793_v33  ;;  %v769_v37 = vadd.f32 %v2499_v12, %v2552_v34  ;;  %v889_v41 = vsel %vm858_vm1, %v836_v55, 0.0 }
 0x178   : > { %923 = vadd.xlane.f32.xlu1 %v922_v39  ;;  %v946_v31 = vsel %vm858_vm1, %v855_v32, 0.0  ;;  %v664_v19 = vadd.f32 %v2521_v13, %v2499_v12  ;;  %v796_v24 = vmax.f32 %v674_v26, 0.0  ;;  %v848_v28 = vmul.f32 %v2507_v20, %v809_v57 }
 0x179   : > { %893 = vadd.xlane.f32.xlu0 %v892_v27  ;;  %v839_v27 = vmul.f32 %v2507_v20, %v800_v21  ;;  %v877_v22 = vsel %vm858_vm1, %v832_v23, 0.0  ;;  %v815_v39 = vmax.f32 %v769_v37, 0.0  ;;  %v689_v34 = vadd.f32 %v2499_v12, %v2548_v30 }
 0x17a   : > { %v784_v15 = vadd.f32 %v2558_v17, %v2499_v12  ;;  %v744_v38 = vadd.f32 %v2523_v14, %v2499_v12  ;;  %v794_v13 = vmax.f32 %v664_v19, 0.0  ;;  %v925_v36 = vsel %vm858_vm1, %v848_v28, 0.0  ;;  %v2632_v14 = vld [vmem:[%s3068_s5] ss:$0 sm:$0xff] }
 0x17b   : > { %v898_v42 = vsel %vm858_vm1, %v839_v27, 0.0  ;;  %v835_v35 = vmul.f32 %v2507_v20, %v796_v24  ;;  %v799_v40 = vmax.f32 %v689_v34, 0.0  ;;  %v854_v33 = vmul.f32 %v2507_v20, %v815_v39 }
 0x17c   : > { %872 = vadd.xlane.f32.xlu1 %v871_v29  ;;  %v818_v30 = vmax.f32 %v784_v15, 0.0  ;;  %v810_v29 = vmax.f32 %v744_v38, 0.0  ;;  %v1254_v26 = vmul.f32 %v2632_v14, %v2374_v46  ;;  %v1264_v27 = vmul.f32 %v2632_v14, %v2454_v2 }
 0x17d   : > { %938 = vadd.xlane.f32.xlu0 %v937_v43  ;;  %v886_v16 = vsel %vm858_vm1, %v835_v35, 0.0  ;;  %v833_v43 = vmul.f32 %v2507_v20, %v794_v13  ;;  %v943_v17 = vsel %vm858_vm1, %v854_v33, 0.0  ;;  %v838_v12 = vmul.f32 %v2507_v20, %v799_v40 }
 0x17e   : > { %v857_v55 = vmul.f32 %v2507_v20, %v818_v30  ;;  %v849_v32 = vmul.f32 %v2507_v20, %v810_v29  ;;  %v1288_v37 = vsel %vm364_vm0, %v1254_v26, 0.0  ;;  %v1253_v19 = vmul.f32 %v2632_v14, %v2364_v44  ;;  %v3102_v26 = vld [vmem:[#allocation17_spill] sm:$0xff] }
 0x17f   : > { %v880_v21 = vsel %vm858_vm1, %v833_v43, 0.0  ;;  %v895_v57 = vsel %vm858_vm1, %v838_v12, 0.0  ;;  %v1265_v44 = vmul.f32 %v2632_v14, %v2460_v4  ;;  %v1256_v28 = vmul.f32 %v2632_v14, %v2388_v50 }
 0x180   : > { %920 = vadd.xlane.f32.xlu1 %v919_v18  ;;  %v952_v18 = vsel %vm858_vm1, %v857_v55, 0.0  ;;  %v928_v23 = vsel %vm858_vm1, %v849_v32, 0.0  ;;  %v1272_v39 = vmul.f32 %v2632_v14, %v2392_v51  ;;  %v1257_v15 = vmul.f32 %v2632_v14, %v2396_v52 }
 0x181   : > { %890 = vadd.xlane.f32.xlu0 %v889_v41  ;;  %v1262_v41 = vmul.f32 %v2632_v14, %v2438_v62  ;;  %v1318_v62 = vsel %vm364_vm0, %v1264_v27, 0.0  ;;  %v1294_v34 = vsel %vm364_vm0, %v1256_v28, 0.0  ;;  %v1271_v13 = vmul.f32 %v2632_v14, %v2382_v48 }
 0x182   : > { %v1297_v38 = vsel %vm364_vm0, %v1257_v15, 0.0  ;;  %v1266_v35 = vmul.f32 %v2632_v14, %v2470_v6  ;;  %v1268_v40 = vmul.f32 %v2632_v14, %v2486_v10  ;;  %v1277_v33 = vmul.f32 %v2632_v14, %v2430_v61 }
 0x183   : > { %v1312_v20 = vsel %vm364_vm0, %v1262_v41, 0.0  ;;  %v1339_v52 = vsel %vm364_vm0, %v1271_v13, 0.0  ;;  %v1280_v30 = vmul.f32 %v2632_v14, %v2458_v3  ;;  %v1259_v29 = vmul.f32 %v2632_v14, %v2412_v56  ;;  %v3104_v41 = vld [vmem:[#allocation19_spill] sm:$0xff] }
 0x184   : > { %878 = vadd.xlane.f32.xlu1 %v877_v22  ;;  %v1258_v22 = vmul.f32 %v2632_v14, %v2406_v54  ;;  %v1342_v54 = vsel %vm364_vm0, %v1272_v39, 0.0  ;;  %v1324_v48 = vsel %vm364_vm0, %v1266_v35, 0.0  ;;  %v1357_v6 = vsel %vm364_vm0, %v1277_v33, 0.0 }
 0x185   : > { %947 = vadd.xlane.f32.xlu0 %v946_v31  ;;  %v1263_v31 = vmul.f32 %v2632_v14, %v2444_v0  ;;  %v1285_v0 = vsel %vm364_vm0, %v1253_v19, 0.0  ;;  %v1366_v10 = vsel %vm364_vm0, %v1280_v30, 0.0  ;;  %v1303_v61 = vsel %vm364_vm0, %v1259_v29, 0.0 }
 0x186   : > { %v1300_v4 = vsel %vm364_vm0, %v1258_v22, 0.0  ;;  %v1273_v43 = vmul.f32 %v2632_v14, %v2398_v53  ;;  %v1260_v12 = vmul.f32 %v2632_v14, %v2422_v58  ;;  %v1284_v55 = vmul.f32 %v2632_v14, %v2490_v11 }
 0x187   : > { %v1315_v46 = vsel %vm364_vm0, %v1263_v31, 0.0  ;;  %v1275_v58 = vmul.f32 %v2632_v14, %v3102_v26 }
 0x188   : > { %926 = vadd.xlane.f32.xlu1 %v925_v36  ;;  %v1279_v36 = vmul.f32 %v2632_v14, %v2446_v1  ;;  %v1330_v1 = vsel %vm364_vm0, %v1268_v40, 0.0  ;;  %v1345_v56 = vsel %vm364_vm0, %v1273_v43, 0.0  ;;  %v1306_v53 = vsel %vm364_vm0, %v1260_v12, 0.0 }
 0x189   : > { %899 = vadd.xlane.f32.xlu0 %v898_v42  ;;  %v1278_v42 = vmul.f32 %v2632_v14, %v2442_v63 }
 0x18b   : > { %v1360_v51 = vsel %vm364_vm0, %v1278_v42, 0.0 }
 0x18c   : > { %887 = vadd.xlane.f32.xlu1 %v886_v16  ;;  %v1281_v16 = vmul.f32 %v2632_v14, %v2462_v5 }
 0x18d   : > { %944 = vadd.xlane.f32.xlu0 %v943_v17  ;;  %v1282_v17 = vmul.f32 %v2632_v14, %v2474_v7  ;;  %v1378_v7 = vsel %vm364_vm0, %v1284_v55, 0.0 }
 0x18e   : > { %v1369_v3 = vsel %vm364_vm0, %v1281_v16, 0.0 }
 0x18f   : > { %v1372_v5 = vsel %vm364_vm0, %v1282_v17, 0.0 }
 0x190   : > { %881 = vadd.xlane.f32.xlu1 %v880_v21  ;;  %v3101_v21 = vld [vmem:[#allocation16_spill] sm:$0xff] }
 0x191   : > { %896 = vadd.xlane.f32.xlu0 %v895_v57  ;;  %v1274_v32 = vmul.f32 %v2632_v14, %v3101_v21 }
 0x193   : > { %v1348_v57 = vsel %vm364_vm0, %v1274_v32, 0.0 }
 0x194   : > { %929 = vadd.xlane.f32.xlu1 %v928_v23  ;;  %v3103_v23 = vld [vmem:[#allocation18_spill] sm:$0xff] }
 0x195   : > { %953 = vadd.xlane.f32.xlu0 %v952_v18  ;;  %v1351_v18 = vsel %vm364_vm0, %v1275_v58, 0.0  ;;  %v1276_v11 = vmul.f32 %v2632_v14, %v3103_v23 }
 0x198   : > { %1289 = vadd.xlane.f32.xlu1 %v1288_v37  ;;  %v1354_v37 = vsel %vm364_vm0, %v1276_v11, 0.0 }
 0x199   : > { %950 = vadd.xlane.f32.xlu0 %v2585_v59  ;;  %v1270_v59 = vmul.f32 %v2632_v14, %v2376_v47  ;;  %v1321_v47 = vsel %vm364_vm0, %v1265_v44, 0.0 }
 0x19b   : > { %v1336_v2 = vsel %vm364_vm0, %v1270_v59, 0.0 }
 0x19c   : > { %1313 = vadd.xlane.f32.xlu1 %v1312_v20  ;;  %v1283_v20 = vmul.f32 %v2632_v14, %v3104_v41 }
 0x19d   : > { %902 = vadd.xlane.f32.xlu0 %v2582_v9  ;;  %v1261_v9 = vmul.f32 %v2632_v14, %v2428_v60 }
 0x19e   : > { %v1375_v31 = vsel %vm364_vm0, %v1283_v20, 0.0 }
 0x19f   : > { %v1309_v24 = vsel %vm364_vm0, %v1261_v9, 0.0 }
 0x1a0   : > { %1316 = vadd.xlane.f32.xlu1 %v1315_v46 }
 0x1a1   : > { %905 = vadd.xlane.f32.xlu0 %v2578_v25  ;;  %v1255_v25 = vmul.f32 %v2632_v14, %v2386_v49  ;;  %v1269_v49 = vmul.f32 %v2632_v14, %v2372_v45  ;;  %v1267_v45 = vmul.f32 %v2632_v14, %v2476_v8  ;;  %v1363_v8 = vsel %vm364_vm0, %v1279_v36, 0.0 }
 0x1a3   : > { %v1291_v60 = vsel %vm364_vm0, %v1255_v25, 0.0  ;;  %v1333_v50 = vsel %vm364_vm0, %v1269_v49, 0.0  ;;  %v1327_v63 = vsel %vm364_vm0, %v1267_v45, 0.0  ;;  %v2751_v45 = vstv %s338_s23  ;;  %s1598_s23 = scalar_lea.sflag [#allocation5], %s2311_s19 }
 0x1a4   : > { %1319 = vadd.xlane.f32.xlu1 %v1318_v62 }
 0x1a5   : > { %1286 = vadd.xlane.f32.xlu0 %v1285_v0 }
 0x1a8   : > { %1337 = vadd.xlane.f32.xlu1 %v1336_v2 }
 0x1a9   : > { %1310 = vadd.xlane.f32.xlu0 %v1309_v24 }
 0x1ac   : > { %1322 = vadd.xlane.f32.xlu1 %v1321_v47 }
 0x1ad   : > { %1292 = vadd.xlane.f32.xlu0 %v1291_v60 }
 0x1b0   : > { %1301 = vadd.xlane.f32.xlu1 %v1300_v4 }
 0x1b1   : > { %1295 = vadd.xlane.f32.xlu0 %v1294_v34  ;;  %v988_v34 = vlaneseq }
 0x1b3   : > { %v1030_v15 = vand.u32 127, %v988_v34 }
 0x1b4   : > { %1343 = vadd.xlane.f32.xlu1 %v1342_v54 }
 0x1b5   : > { %1334 = vadd.xlane.f32.xlu0 %v1333_v50  ;;  %v989_v50 = vshrl.u32 %v988_v34, 7 }
 0x1b7   : > { %v2759_v35 = vsub.s32 %v1030_v15, %v989_v50 }
 0x1b8   : > { %1361 = vadd.xlane.f32.xlu1 %v1360_v51 }
 0x1b9   : > { %1298 = vadd.xlane.f32.xlu0 %v1297_v38 }
 0x1bc   : > { %1328 = vadd.xlane.f32.xlu1 %v1327_v63 }
 0x1bd   : > { %1340 = vadd.xlane.f32.xlu0 %v1339_v52 }
 0x1c0   : > { %1364 = vadd.xlane.f32.xlu1 %v1363_v8 }
 0x1c1   : > { %1325 = vadd.xlane.f32.xlu0 %v1324_v48 }
 0x1c4   : > { %1331 = vadd.xlane.f32.xlu1 %v1330_v1 }
 0x1c5   : > { %1358 = vadd.xlane.f32.xlu0 %v1357_v6 }
 0x1c8   : > { %1367 = vadd.xlane.f32.xlu1 %v1366_v10 }
 0x1c9   : > { %1304 = vadd.xlane.f32.xlu0 %v1303_v61 }
 0x1cc   : > { %1370 = vadd.xlane.f32.xlu1 %v1369_v3 }
 0x1cd   : > { %1346 = vadd.xlane.f32.xlu0 %v1345_v56  ;;  %v2772_v56 = vadd.s32 24, %v989_v50 }
 0x1cf   : > { %vm996_vm9 = vcmp.lt.s32.totalorder %v2772_v56, 28 }
 0x1d0   : > { %1373 = vadd.xlane.f32.xlu1 %v1372_v5 }
 0x1d1   : > { %1307 = vadd.xlane.f32.xlu0 %v1306_v53 }
 0x1d4   : > { %1379 = vadd.xlane.f32.xlu1 %v1378_v7 }
 0x1d5   : > { %1349 = vadd.xlane.f32.xlu0 %v1348_v57 }
 0x1d9   : > { %1352 = vadd.xlane.f32.xlu0 %v1351_v18 }
 0x1dd   : > { %1355 = vadd.xlane.f32.xlu0 %v1354_v37 }
 0x1e1   : > { %1376 = vadd.xlane.f32.xlu0 %v1375_v31 }
 0x1e5   : > { %v864_v46 = vpop.xlane.xlu1 %863 }
 0x1e6   : > { %v957_v13 = vadd.f32 %v2751_v45, %v864_v46 }
 0x1e7   : > { %v909_v59 = vpop.xlane.xlu0 %908 }
 0x1e8   : > { %v972_v48 = vadd.f32 %v2751_v45, %v909_v59  ;;  %v1038_v30 = vrot.slane %v957_v13, %v2759_v35 }
 0x1e9   : > { %v912_v27 = vpop.xlane.xlu1 %911 }
 0x1ea   : > { %v973_v36 = vadd.f32 %v2751_v45, %v912_v27  ;;  %v1098_v12 = vrot.slane %v972_v48, %v2759_v35 }
 0x1ec   : > { %v1102_v10 = vrot.slane %v973_v36, %v2759_v35 }
 0x1ed   : > { %v861_v19 = vpop.xlane.xlu1 %860 }
 0x1ee   : > { %v956_v63 = vadd.f32 %v2751_v45, %v861_v19  ;;  %v1180_v58 = vsel %vm1159_vm2, %v1102_v10, %v1098_v12 }
 0x1f0   : > { %v1034_v6 = vrot.slane %v956_v63, %v2759_v35 }
 0x1f1   : > { %v870_v62 = vpop.xlane.xlu1 %869 }
 0x1f2   : > { %v959_v5 = vadd.f32 %v2751_v45, %v870_v62  ;;  %v1160_v32 = vsel %vm1159_vm2, %v1038_v30, %v1034_v6 }
 0x1f4   : > { %v1046_v27 = vrot.slane %v959_v5, %v2759_v35 }
 0x1f5   : > { %v918_v0 = vpop.xlane.xlu1 %917 }
 0x1f6   : > { %v936_v9 = vpop.xlane.xlu0 %935  ;;  %v975_v55 = vadd.f32 %v2751_v45, %v918_v0 }
 0x1f7   : > { %v981_v16 = vadd.f32 %v2751_v45, %v936_v9 }
 0x1f8   : > { %v1110_v19 = vrot.slane %v975_v55, %v2759_v35 }
 0x1f9   : > { %v867_v2 = vpop.xlane.xlu1 %866  ;;  %v1134_v18 = vrot.slane %v981_v16, %v2759_v35 }
 0x1fa   : > { %v933_v44 = vpop.xlane.xlu0 %932  ;;  %v958_v52 = vadd.f32 %v2751_v45, %v867_v2 }
 0x1fb   : > { %v980_v33 = vadd.f32 %v2751_v45, %v933_v44 }
 0x1fc   : > { %v1042_v61 = vrot.slane %v958_v52, %v2759_v35 }
 0x1fd   : > { %v915_v24 = vpop.xlane.xlu1 %914  ;;  %v1130_v53 = vrot.slane %v980_v33, %v2759_v35 }
 0x1fe   : > { %v885_v25 = vpop.xlane.xlu0 %884  ;;  %v974_v8 = vadd.f32 %v2751_v45, %v915_v24  ;;  %v1162_v23 = vsel %vm1161_vm3, %v1042_v61, %v1160_v32 }
 0x1ff   : > { %v964_v7 = vadd.f32 %v2751_v45, %v885_v25  ;;  %v1187_v62 = vsel %vm1159_vm2, %v1134_v18, %v1130_v53 }
 0x200   : > { %v1106_v43 = vrot.slane %v974_v8, %v2759_v35 }
 0x201   : > { %v876_v47 = vpop.xlane.xlu1 %875  ;;  %v1066_v9 = vrot.slane %v964_v7, %v2759_v35 }
 0x202   : > { %v942_v22 = vpop.xlane.xlu0 %941  ;;  %v1181_v37 = vsel %vm1161_vm3, %v1106_v43, %v1180_v58  ;;  %v2788_v41 = vadd.f32 %v2751_v45, %v876_v47  ;;  %v1164_v47 = vsel %vm1163_vm4, %v1046_v27, %v1162_v23 }
 0x203   : > { %v983_v11 = vadd.f32 %v2751_v45, %v942_v22  ;;  %v1182_v22 = vsel %vm1163_vm4, %v1110_v19, %v1181_v37 }
 0x205   : > { %v2739_v60 = vpop.xlane.xlu1 %923  ;;  %v1142_v25 = vrot.slane %v983_v11, %v2759_v35 }
 0x206   : > { %v2741_v14 = vpop.xlane.xlu0 %893  ;;  %v977_v52 = vadd.f32 %v2751_v45, %v2739_v60 }
 0x209   : > { %v873_v28 = vpop.xlane.xlu1 %872 }
 0x20a   : > { %v939_v4 = vpop.xlane.xlu0 %938  ;;  %v960_v20 = vadd.f32 %v2751_v45, %v873_v28 }
 0x20b   : > { %v982_v29 = vadd.f32 %v2751_v45, %v939_v4  ;;  %v1054_v4 = vrot.slane %v2788_v41, %v2759_v35 }
 0x20d   : > { %v2743_v39 = vpop.xlane.xlu1 %920  ;;  %v1138_v57 = vrot.slane %v982_v29, %v2759_v35 }
 0x20e   : > { %v891_v49 = vpop.xlane.xlu0 %890  ;;  %v976_v44 = vadd.f32 %v2751_v45, %v2743_v39  ;;  %v967_v39 = vadd.f32 %v2751_v45, %v2741_v14 }
 0x20f   : > { %v966_v59 = vadd.f32 %v2751_v45, %v891_v49  ;;  %v1188_v2 = vsel %vm1161_vm3, %v1138_v57, %v1187_v62  ;;  %v1050_v49 = vrot.slane %v960_v20, %v2759_v35  ;;  %v1118_v57 = vrot.slane %v977_v52, %v2759_v35 }
 0x210   : > { %v1189_v13 = vsel %vm1163_vm4, %v1142_v25, %v1188_v2  ;;  %v1114_v14 = vrot.slane %v976_v44, %v2759_v35  ;;  %v1078_v6 = vrot.slane %v967_v39, %v2759_v35 }
 0x211   : > { %v2745_v54 = vpop.xlane.xlu1 %878  ;;  %v1074_v15 = vrot.slane %v966_v59, %v2759_v35  ;;  %v1166_v61 = vsel %vm1165_vm5, %v1050_v49, %v1164_v47 }
 0x212   : > { %v2747_v42 = vpop.xlane.xlu0 %947  ;;  %v962_v33 = vadd.f32 %v2751_v45, %v2745_v54  ;;  %v1183_v53 = vsel %vm1165_vm5, %v1114_v14, %v1182_v22  ;;  %v1168_v18 = vsel %vm1167_vm6, %v1054_v4, %v1166_v61 }
 0x213   : > { %v985_v28 = vadd.f32 %v2751_v45, %v2747_v42  ;;  %v1184_v20 = vsel %vm1167_vm6, %v1118_v57, %v1183_v53 }
 0x215   : > { %v2749_v51 = vpop.xlane.xlu1 %926  ;;  %v1150_v48 = vrot.slane %v985_v28, %v2759_v35 }
 0x216   : > { %v2753_v38 = vpop.xlane.xlu0 %899 }
 0x217   : > { %v969_v12 = vadd.f32 %v2751_v45, %v2753_v38 }
 0x219   : > { %v888_v40 = vpop.xlane.xlu1 %887  ;;  %v1086_v41 = vrot.slane %v969_v12, %v2759_v35 }
 0x21a   : > { %v945_v1 = vpop.xlane.xlu0 %944  ;;  %v965_v3 = vadd.f32 %v2751_v45, %v888_v40 }
 0x21b   : > { %v984_v26 = vadd.f32 %v2751_v45, %v945_v1  ;;  %v978_v1 = vadd.f32 %v2751_v45, %v2749_v51 }
 0x21c   : > { %v1070_v31 = vrot.slane %v965_v3, %v2759_v35 }
 0x21d   : > { %v882_v17 = vpop.xlane.xlu1 %881  ;;  %v1146_v24 = vrot.slane %v984_v26, %v2759_v35  ;;  %v1122_v32 = vrot.slane %v978_v1, %v2759_v35 }
 0x21e   : > { %v897_v21 = vpop.xlane.xlu0 %896  ;;  %v1173_v34 = vsel %vm1159_vm2, %v1070_v31, %v1066_v9  ;;  %v963_v60 = vadd.f32 %v2751_v45, %v882_v17 }
 0x21f   : > { %v968_v42 = vadd.f32 %v2751_v45, %v897_v21  ;;  %v1190_v8 = vsel %vm1165_vm5, %v1146_v24, %v1189_v13  ;;  %v1174_v30 = vsel %vm1161_vm3, %v1074_v15, %v1173_v34  ;;  %v1058_v21 = vrot.slane %v962_v33, %v2759_v35 }
 0x220   : > { %v1191_v51 = vsel %vm1167_vm6, %v1150_v48, %v1190_v8  ;;  %v1175_v17 = vsel %vm1163_vm4, %v1078_v6, %v1174_v30  ;;  %v1062_v26 = vrot.slane %v963_v60, %v2759_v35  ;;  %v1185_v19 = vsel %vm1169_vm7, %v1122_v32, %v1184_v20 }
 0x221   : > { %v930_v46 = vpop.xlane.xlu1 %929  ;;  %v1082_v43 = vrot.slane %v968_v42, %v2759_v35  ;;  %v1170_v27 = vsel %vm1169_vm7, %v1058_v21, %v1168_v18 }
 0x222   : > { %v954_v0 = vpop.xlane.xlu0 %953  ;;  %v979_v29 = vadd.f32 %v2751_v45, %v930_v46  ;;  %v1172_v62 = vsel %vm1171_vm8, %v1062_v26, %v1170_v27 }
 0x223   : > { %v987_v63 = vadd.f32 %v2751_v45, %v954_v0  ;;  %v1176_v23 = vsel %vm1165_vm5, %v1082_v43, %v1175_v17  ;;  %v1203_v25 = vsel %vm1202_vm10, %v1172_v62, -inf }
 0x224   : > { %v1126_v38 = vrot.slane %v979_v29, %v2759_v35  ;;  %v1177_v0 = vsel %vm1167_vm6, %v1086_v41, %v1176_v23 }
 0x225   : > { %v2813_v50 = vpop.xlane.xlu1 %1289  ;;  %v1158_v54 = vrot.slane %v987_v63, %v2759_v35 }
 0x226   : > { %v951_v36 = vpop.xlane.xlu0 %950  ;;  %v1186_v59 = vsel %vm1171_vm8, %v1126_v38, %v1185_v19 }
 0x227   : > { %v986_v40 = vadd.f32 %v2751_v45, %v951_v36  ;;  %v1205_v47 = vsel %vm1202_vm10, %v1186_v59, -inf }
 0x229   : > { %v1154_v10 = vrot.slane %v986_v40, %v2759_v35  ;;  %v2834_v16 = vpop.xlane.xlu1 %1313 }
 0x22a   : > { %v903_v3 = vpop.xlane.xlu0 %902 }
 0x22b   : > { %v1192_v5 = vsel %vm1169_vm7, %v1154_v10, %v1191_v51  ;;  %v970_v55 = vadd.f32 %v2751_v45, %v903_v3 }
 0x22c   : > { %v1193_v7 = vsel %vm1171_vm8, %v1158_v54, %v1192_v5 }
 0x22d   : > { %v2852_v58 = vpop.xlane.xlu1 %1316  ;;  %v1090_v11 = vrot.slane %v970_v55, %v2759_v35  ;;  %v1201_v31 = vsel %vm996_vm9, %v1193_v7, -1e+30 }
 0x22e   : > { %v906_v37 = vpop.xlane.xlu0 %905  ;;  %v1206_v56 = vsel %vm1202_vm10, %v1201_v31, -inf }
 0x22f   : > { %v971_v46 = vadd.f32 %v2751_v45, %v906_v37  ;;  %v1178_v44 = vsel %vm1169_vm7, %v1090_v11, %v1177_v0  ;;  %v1208_v28 = vmax.f32 %v1205_v47, %v1206_v56  ;;  %v1452_v0 = vrot.slane %v2834_v16, %v2759_v35 }
 0x231   : > { %v1094_v9 = vrot.slane %v971_v46, %v2759_v35  ;;  %v2868_v2 = vpop.xlane.xlu1 %1319 }
 0x232   : > { %v2872_v45 = vpop.xlane.xlu0 %1286 }
 0x233   : > { %v1179_v24 = vsel %vm1171_vm8, %v1094_v9, %v1178_v44  ;;  %v1416_v16 = vrot.slane %v2872_v45, %v2759_v35 }
 0x234   : > { %v1204_v22 = vsel %vm1202_vm10, %v1179_v24, -inf }
 0x235   : > { %v1207_v4 = vmax.f32 %v1203_v25, %v1204_v22  ;;  %v2878_v39 = vpop.xlane.xlu1 %1337 }
 0x236   : > { %v1311_v49 = vpop.xlane.xlu0 %1310 }
 0x237   : > { %v1209_v34 = vmax.f32 %v1207_v4, %v1208_v28  ;;  %v1448_v9 = vrot.slane %v1311_v49, %v2759_v35  ;;  %v1460_v49 = vrot.slane %v2868_v2, %v2759_v35 }
 0x239   : > { %v1210_v15 = vrot.slane %v1209_v34, 4  ;;  %v2880_v13 = vpop.xlane.xlu1 %1322  ;;  %v1548_v28 = vsel %vm1159_vm2, %v1452_v0, %v1448_v9 }
 0x23a   : > { %v2882_v42 = vpop.xlane.xlu0 %1292 }
 0x23b   : > { %v1211_v63 = vmax.f32 %v1209_v34, %v1210_v15  ;;  %v1420_v34 = vrot.slane %v2813_v50, %v2759_v35  ;;  %v1424_v45 = vrot.slane %v2882_v42, %v2759_v35 }
 0x23d   : > { %v1212_v36 = vrot.slane %v1211_v63, 2  ;;  %v2884_v52 = vpop.xlane.xlu1 %1301 }
 0x23e   : > { %v2886_v14 = vpop.xlane.xlu0 %1295 }
 0x23f   : > { %v1213_v8 = vmax.f32 %v1211_v63, %v1212_v36 }
 0x241   : > { %v1214_v40 = vrot.slane %v1213_v8, 1  ;;  %v2888_v48 = vpop.xlane.xlu1 %1343 }
 0x242   : > { %v2890_v33 = vpop.xlane.xlu0 %1334 }
 0x243   : > { %v1215_v1 = vmax.f32 %v1213_v8, %v1214_v40  ;;  %v1480_v40 = vrot.slane %v2890_v33, %v2759_v35 }
 0x245   : > { %v1216_v30 = vsub.f32 %v1172_v62, %v1215_v1  ;;  %v1217_v6 = vsub.f32 %v1179_v24, %v1215_v1  ;;  %v1218_v60 = vsub.f32 %v1186_v59, %v1215_v1  ;;  %v1219_v29 = vsub.f32 %v1201_v31, %v1215_v1  ;;  %v1362_v10 = vpop.xlane.xlu1 %1361 }
 0x246   : > { %v2892_v61 = vpop.xlane.xlu0 %1298  ;;  %v1456_v24 = vrot.slane %v2852_v58, %v2759_v35  ;;  %v1516_v25 = vrot.slane %v1362_v10, %v2759_v35  ;;  %v1484_v58 = vrot.slane %v2878_v39, %v2759_v35  ;;  %v1464_v39 = vrot.slane %v2880_v13, %v2759_v35 }
 0x247   : > { %v1220_v43 = vmul.f32 1.442695, %v1216_v30  ;;  %v1222_v54 = vmul.f32 1.442695, %v1217_v6  ;;  %v1224_v51 = vmul.f32 1.442695, %v1218_v60  ;;  %v1428_v30 = vrot.slane %v2886_v14, %v2759_v35 }
 0x248   : > { %v1226_v3 = vmul.f32 1.442695, %v1219_v29  ;;  %v1549_v8 = vsel %vm1161_vm3, %v1456_v24, %v1548_v28  ;;  %v1432_v60 = vrot.slane %v2892_v61, %v2759_v35  ;;  %v1541_v10 = vsel %vm1159_vm2, %v1420_v34, %v1416_v16 }
 0x249   : > { %1941 = vpow2.f32 %v1220_v43  ;;  %v2896_v17 = vpop.xlane.xlu1 %1328  ;;  %v1550_v33 = vsel %vm1163_vm4, %v1460_v49, %v1549_v8  ;;  %v1555_v43 = vsel %vm1159_vm2, %v1484_v58, %v1480_v40  ;;  %v1492_v13 = vrot.slane %v2888_v48, %v2759_v35 }
 0x24a   : > { %1943 = vpow2.f32 %v1222_v54  ;;  %v2894_v12 = vpop.xlane.xlu0 %1340 }
 0x24b   : > { %1945 = vpow2.f32 %v1224_v51  ;;  %v1488_v2 = vrot.slane %v2894_v12, %v2759_v35  ;;  %v1542_v51 = vsel %vm1161_vm3, %v1424_v45, %v1541_v10  ;;  %v1593_v10 = vstv %s1592_s17 }
 0x24c   : > { %1947 = vpow2.f32 %v1226_v3 }
 0x24d   : > { %v1365_v55 = vpop.xlane.xlu1 %1364  ;;  %v1556_v3 = vsel %vm1161_vm3, %v1488_v2, %v1555_v43 }
 0x24e   : > { %v2898_v5 = vpop.xlane.xlu0 %1325  ;;  %v1520_v63 = vrot.slane %v1365_v55, %v2759_v35  ;;  %v1551_v55 = vsel %vm1165_vm5, %v1464_v39, %v1550_v33 }
 0x24f   : > { %v1468_v14 = vrot.slane %v2898_v5, %v2759_v35  ;;  %v1436_v5 = vrot.slane %v2884_v52, %v2759_v35 }
 0x251   : > { %v2916_v37 = vpop.xlane.xlu1 %1331 }
 0x252   : > { %v1359_v53 = vpop.xlane.xlu0 %1358  ;;  %v1476_v52 = vrot.slane %v2916_v37, %v2759_v35 }
 0x253   : > { %v2900_v21 = vpop.eup %1941  ;;  %v1512_v47 = vrot.slane %v1359_v53, %v2759_v35  ;;  %v1543_v53 = vsel %vm1163_vm4, %v1428_v30, %v1542_v51 }
 0x254   : > { %v2902_v32 = vpop.eup %1943  ;;  %v1228_v7 = vsel %vm1202_vm10, %v2900_v21, 0.0 }
 0x255   : > { %v2906_v57 = vpop.eup %1945  ;;  %v1229_v26 = vsel %vm1202_vm10, %v2902_v32, 0.0  ;;  %v1368_v19 = vpop.xlane.xlu1 %1367  ;;  %v1562_v50 = vsel %vm1159_vm2, %v1516_v25, %v1512_v47 }
 0x256   : > { %v2910_v38 = vpop.eup %1947  ;;  %v1230_v18 = vadd.f32 %v1229_v26, %v1228_v7  ;;  %v2912_v23 = vpop.xlane.xlu0 %1304  ;;  %v1231_v11 = vsel %vm1202_vm10, %v2906_v57, 0.0  ;;  %v1524_v6 = vrot.slane %v1368_v19, %v2759_v35  ;;  %v1563_v29 = vsel %vm1161_vm3, %v1520_v63, %v1562_v50 }
 0x257   : > { %v1233_v20 = vsel %vm1202_vm10, %v2910_v38, 0.0  ;;  %v1544_v26 = vsel %vm1165_vm5, %v1432_v60, %v1543_v53 }
 0x258   : > { %v1232_v41 = vadd.f32 %v1231_v11, %v1230_v18  ;;  %v1564_v7 = vsel %vm1163_vm4, %v1524_v6, %v1563_v29  ;;  %v1472_v18 = vrot.slane %v2896_v17, %v2759_v35  ;;  %v1545_v24 = vsel %vm1167_vm6, %v1436_v5, %v1544_v26  ;;  %v1590_v29 = vld [vmem:[%s337_s11] sm:$0x1] }
 0x259   : > { %v1371_v4 = vpop.xlane.xlu1 %1370 }
 0x25a   : > { %v1234_v31 = vadd.f32 %v1233_v20, %v1232_v41  ;;  %v1347_v46 = vpop.xlane.xlu0 %1346  ;;  %v1528_v12 = vrot.slane %v1371_v4, %v2759_v35  ;;  %v1552_v20 = vsel %vm1167_vm6, %v1468_v14, %v1551_v55 }
 0x25b   : > { %v1496_v61 = vrot.slane %v1347_v46, %v2759_v35  ;;  %v1557_v46 = vsel %vm1163_vm4, %v1492_v13, %v1556_v3 }
 0x25c   : > { %v1235_v27 = vrot.slane %v1234_v31, 4  ;;  %v1565_v17 = vsel %vm1165_vm5, %v1528_v12, %v1564_v7 }
 0x25d   : > { %v1374_v42 = vpop.xlane.xlu1 %1373 }
 0x25e   : > { %v1236_v62 = vadd.f32 %v1235_v27, %v1234_v31  ;;  %v2920_v59 = vpop.xlane.xlu0 %1307  ;;  %v1532_v48 = vrot.slane %v1374_v42, %v2759_v35  ;;  %v1440_v31 = vrot.slane %v2912_v23, %v2759_v35 }
 0x25f   : > { %v1444_v9 = vrot.slane %v2920_v59, %v2759_v35 }
 0x260   : > { %v1237_v56 = vrot.slane %v1236_v62, 2  ;;  %v1546_v28 = vsel %vm1169_vm7, %v1440_v31, %v1545_v24 }
 0x261   : > { %v1380_v41 = vpop.xlane.xlu1 %1379  ;;  %v1547_v49 = vsel %vm1171_vm8, %v1444_v9, %v1546_v28 }
 0x262   : > { %v1238_v44 = vadd.f32 %v1237_v56, %v1236_v62  ;;  %v1350_v22 = vpop.xlane.xlu0 %1349  ;;  %v1558_v62 = vsel %vm1165_vm5, %v1496_v61, %v1557_v46  ;;  %v1566_v56 = vsel %vm1167_vm6, %v1532_v48, %v1565_v17 }
 0x263   : > { %v1500_v11 = vrot.slane %v1350_v22, %v2759_v35  ;;  %v1553_v22 = vsel %vm1169_vm7, %v1472_v18, %v1552_v20 }
 0x264   : > { %v1239_v15 = vrot.slane %v1238_v44, 1  ;;  %v1554_v16 = vsel %vm1171_vm8, %v1476_v52, %v1553_v22 }
 0x265   : > { %v1559_v25 = vsel %vm1167_vm6, %v1500_v11, %v1558_v62 }
 0x266   : > { %v1240_v36 = vadd.f32 %v1239_v15, %v1238_v44  ;;  %v1353_v1 = vpop.xlane.xlu0 %1352  ;;  %v1540_v44 = vrot.slane %v1380_v41, %v2759_v35 }
 0x267   : > { %v1504_v27 = vrot.slane %v1353_v1, %v2759_v35 }
 0x268   : > { %1949 = vrcp.f32 %v1240_v36 }
 0x269   : > { %v1560_v4 = vsel %vm1169_vm7, %v1504_v27, %v1559_v25 }
 0x26a   : > { %v1356_v54 = vpop.xlane.xlu0 %1355 }
 0x26b   : > { %v1508_v23 = vrot.slane %v1356_v54, %v2759_v35 }
 0x26d   : > { %v1561_v58 = vsel %vm1171_vm8, %v1508_v23, %v1560_v4 }
 0x26e   : > { %v1377_v19 = vpop.xlane.xlu0 %1376 }
 0x26f   : > { %v1536_v0 = vrot.slane %v1377_v19, %v2759_v35 }
 0x271   : > { %v1567_v37 = vsel %vm1169_vm7, %v1536_v0, %v1566_v56 }
 0x272   : > { %v1950_v47 = vpop.eup %1949  ;;  %v1568_v63 = vsel %vm1171_vm8, %v1540_v44, %v1567_v37 }
 0x273   : > { %v1243_v59 = vmul.f32 %v1950_v47, %v2902_v32  ;;  %v1242_v34 = vmul.f32 %v1950_v47, %v2900_v21  ;;  %v1244_v15 = vmul.f32 %v1950_v47, %v2906_v57  ;;  %v1245_v35 = vmul.f32 %v1950_v47, %v2910_v38 }
 0x275   : > { %v1574_v36 = vmul.f32 %v1554_v16, %v1243_v59  ;;  %v1573_v8 = vmul.f32 %v1547_v49, %v1242_v34  ;;  %v1575_v40 = vmul.f32 %v1561_v58, %v1244_v15  ;;  %v1576_v57 = vmul.f32 %v1568_v63, %v1245_v35 }
 0x277   : > { %v1578_v32 = vsel %vm1202_vm10, %v1574_v36, 0.0  ;;  %v1577_v21 = vsel %vm1202_vm10, %v1573_v8, 0.0  ;;  %v1580_v38 = vsel %vm1202_vm10, %v1575_v40, 0.0  ;;  %v1582_v45 = vsel %vm1202_vm10, %v1576_v57, 0.0 }
 0x278   : > { %v1579_v50 = vadd.f32 %v1578_v32, %v1577_v21 }
 0x27a   : > { %v1581_v1 = vadd.f32 %v1580_v38, %v1579_v50 }
 0x27c   : > { %v1583_v2 = vadd.f32 %v1582_v45, %v1581_v1 }
 0x27e   : > { %v1584_v39 = vrot.slane %v1583_v2, 4 }
 0x280   : > { %v1585_v30 = vadd.f32 %v1584_v39, %v1583_v2 }
 0x282   : > { %v1586_v6 = vrot.slane %v1585_v30, 2 }
 0x284   : > { %v1587_v33 = vadd.f32 %v1586_v6, %v1585_v30 }
 0x286   : > { %v1588_v60 = vrot.slane %v1587_v33, 1 }
 0x288   : > { %v1589_v42 = vadd.f32 %v1588_v60, %v1587_v33 }
 0x28a   : > { %v1591_v43 = vadd.f32 %v1590_v29, %v1589_v42 }
 0x28c   : > { %v1594_v13 = vadd.f32 %v1593_v10, %v1591_v43 }
 0x28e   : > { %1596 = vst.msk [vmem:[%s334_s15] sm:$0x1] %vm1595_vm11, %v1594_v13 }
 0x28f   : > { %2037 = shalt.err (!%p2034_p8)
}
 0x290   : > { %s2038_s19 = scalar_lea.hbm %s3019_s8, 16  ;;  %s2042_s11 = scalar_lea.hbm %s3070_s7, 32 }
 0x291   : > { %p2039_p1 = scmp.ne.s32.totalorder %s3019_s8, %s2038_s19  ;;  %p2043_p12 = scmp.lt.u32.totalorder %s3019_s8, %s3070_s7 }
 0x292   : > { %p2044_p13 = scmp.lt.u32.totalorder %s2042_s11, %s2038_s19  ;;  %p2046_p3 = scmp.lt.u32.totalorder %s2038_s19, %s3019_s8 }
 0x293   : > { %p2040_p5 = pnand %p2039_p1, %p3105_p7 }
 0x294   : > { %p2045_p0 = por %p2044_p13, %p2043_p12 }
 0x295   : > { %p2041_p11 = pneg %p2040_p5 }
 0x296   : > { %p2047_p9 = por %p2046_p3, %p2045_p0 }
 0x298   : > { %p2048_p2 = pnand %p2047_p9, %p2041_p11 }
 0x29a   : > { %2051 = shalt.err (!%p2048_p2)
}
 0x29b   : > { %1879 = dma.vmem_to_hbm [thread:$0]  (%p3105_p7), %s3021_s29, 16, %s3019_s8, %s1598_s23  }
 0x29c PF: > { %s1622_s15 = sand.u32 1, %s2086_s24   ;;  %p3106_p10 = scmp.ne.s32.totalorder %s3084_s14, 0 }
 0x29d   : > { %p3107_p4 = scmp.ge.s32.totalorder %s2098_s27, 2  ;;  %s1623_s22 = scalar_lea.sflag [#allocation5], %s1622_s15 }
 0x29f   : > { %p1893_p6 = pnand %p3107_p4, %p3106_p10 }
 0x2a1   : > { %2081 = dma.done.wait (!%p1893_p6), %s1623_s22, 16  }
 0x2a2   : > { %2083 = vsyncadd (!%p1893_p6), %s1623_s22, 4294967280  ;;  %s3108_s18 = sld [smem:[#allocation15_spill]]  ;;  %p22_p8 = scmp.ge.s32.totalorder %s2174_s30, 4  }
 0x2a3   : > { %s3109_s24 = smov %s2090_s25  ;;  %s3110_s25 = smov %s2094_s26 }
 0x2a4   : > { %s3112_s27 = smov %s2174_s30  ;;  %24 = sbr.rel (!%p22_p8) target bundleno = 7 (0x7), region = 112 }
 0x2a8   : > { %s3111_s26 = smov %s3108_s18 }
 0x2ab   :  { %1627 = vsyncpa [#allocation4], 1 }
 0x2ac   :  { %1629 = vsyncpa [#allocation4 + $0x1], 1 }
 0x2ad   :  { %1630 = vsyncpa [#allocation8], 1 }
 0x2ae   :  { %1631 = vsyncpa [#allocation5], 1 }
 0x2af   :  { %1633 = vsyncpa [#allocation5 + $0x1], 1 }
 0x2b0   :  { %1634 = vsyncpa [#allocation6], 1 }
 0x2b1   :  { %1636 = vsyncpa [#allocation6 + $0x1], 1 }

</bundles_post_ra>
